<compile_context>
chip_gen: v7x
topology: tpu7x:2x2x1
jax: 0.10.0
libtpu: 0.0.40
codegen_flags: <defaults>
</compile_context>

<pallas_src>
import functools
import math

import jax
import jax.numpy as jnp
from jax.experimental import pallas as pl
from jax.experimental.pallas import tpu as pltpu


def _mha_kernel(xq_ref, xkv_ref, wq_ref, wk_ref, wv_ref, wp_ref, bp_ref,
                o_ref,
                q_s, m_s, l_s, acc_s,
                *, scale, compute_dtype, group, head_dim):
    hg = pl.program_id(2)
    ki = pl.program_id(3)
    n_k = pl.num_programs(3)

    # ---- new (batch, query-tile, head-group): project + pre-scale Q, reset ----
    @pl.when(ki == 0)
    def _init():
        q = jnp.dot(xq_ref[0], wq_ref[0], preferred_element_type=jnp.float32)
        q_s[...] = (q * scale).astype(q_s.dtype)     # fold softmax scale into Q
        m_s[...] = jnp.full(m_s.shape, -jnp.inf, dtype=m_s.dtype)
        l_s[...] = jnp.zeros(l_s.shape, dtype=l_s.dtype)
        acc_s[...] = jnp.zeros(acc_s.shape, dtype=acc_s.dtype)

    # ---- project K / V for all G heads of the group in one wide matmul ----
    x_kv = xkv_ref[0]                                               # (tk, C) bf16
    k = jnp.dot(x_kv, wk_ref[0],
                preferred_element_type=jnp.float32).astype(compute_dtype)
    v = jnp.dot(x_kv, wv_ref[0],
                preferred_element_type=jnp.float32).astype(compute_dtype)

    # ---- per-head online softmax update (small static unroll over G) ----
    for g in range(group):
        lo, hi = g * head_dim, (g + 1) * head_dim
        q_h = q_s[:, lo:hi]                                         # (tq, hd) bf16
        k_h = k[:, lo:hi]
        v_h = v[:, lo:hi]
        # s = q @ k^T (contract head_dim) without materializing k.T
        s = jax.lax.dot_general(q_h, k_h, (((1,), (1,)), ((), ())),
                                preferred_element_type=jnp.float32)  # (tq, tk)
        m_prev = m_s[:, g:g + 1]
        m_new = jnp.maximum(m_prev, jnp.max(s, axis=-1, keepdims=True))
        alpha = jnp.exp(m_prev - m_new)
        p = jnp.exp(s - m_new)
        l_s[:, g:g + 1] = alpha * l_s[:, g:g + 1] + jnp.sum(p, axis=-1,
                                                            keepdims=True)
        acc_s[:, lo:hi] = alpha * acc_s[:, lo:hi] + jnp.dot(
            p.astype(compute_dtype), v_h, preferred_element_type=jnp.float32)
        m_s[:, g:g + 1] = m_new

    # ---- last KV tile: normalize the group, fold through proj in ONE wide
    #      (tq, G*hd) @ (G*hd, C) matmul, accumulate into the resident output ----
    @pl.when(ki == n_k - 1)
    def _finalize_group():
        for g in range(group):
            lo, hi = g * head_dim, (g + 1) * head_dim
            inv_l = pl.reciprocal(l_s[:, g:g + 1], approx=True)
            acc_s[:, lo:hi] = acc_s[:, lo:hi] * inv_l
        contrib = jnp.dot(acc_s[...].astype(compute_dtype), wp_ref[0],
                          preferred_element_type=jnp.float32)        # (tq, C)

        @pl.when(hg == 0)
        def _():
            o_ref[0] = (contrib + bp_ref[...]).astype(o_ref.dtype)   # bias once

        @pl.when(hg != 0)
        def _():
            o_ref[0] = o_ref[0] + contrib.astype(o_ref.dtype)


def _pick_tile(n, target):
    """Largest divisor of n <= target, preferring multiples of 128, then 16,
    then 8 (MXU / bf16-sublane friendly); falls back to the full extent."""
    if n <= target:
        return n
    for align in (128, 16, 8):
        best = 0
        for t in range(align, min(target, n) + 1, align):
            if n % t == 0:
                best = t
        if best:
            return best
    return n


def _pick_group(num_heads, head_dim, target_width=256):
    """Largest divisor G of num_heads with G*head_dim <= ~target_width."""
    g = max(1, min(num_heads, target_width // max(head_dim, 1)))
    while num_heads % g:
        g -= 1
    return g


def attention_forward(x, w_qkv, w_proj, b_proj, *, num_heads=8,
                      compute_dtype=jnp.bfloat16, tq=512, tk=512,
                      head_group=None):
    """x: (B, N, C) f32. w_qkv: (C, 3C). w_proj: (C, C). b_proj: (C,)."""
    B, N, C = x.shape
    assert C % num_heads == 0, "dim must be divisible by num_heads"
    hd = C // num_heads
    scale = hd ** (-0.5)

    tq = _pick_tile(N, tq)
    tk = _pick_tile(N, tk)
    n_q = N // tq
    n_k = N // tk

    G = _pick_group(num_heads, hd) if head_group is None else head_group
    assert num_heads % G == 0, "head_group must divide num_heads"
    n_hg = num_heads // G
    gw = G * hd                      # head-group width (aims at 256 on v6e/v7x)

    # Host-side weight re-layout (cheap, once per call): columns of w_qkv are
    # already head-major, so head groups are contiguous slabs.
    #   w_qkv (C, 3C) -> per-group (n_hg, C, G*hd) blocks for q / k / v,
    #   w_proj (C, C) -> rows grouped by head group: (n_hg, G*hd, C).
    wq = w_qkv[:, 0 * C:1 * C].reshape(C, n_hg, gw).transpose(1, 0, 2)
    wk = w_qkv[:, 1 * C:2 * C].reshape(C, n_hg, gw).transpose(1, 0, 2)
    wv = w_qkv[:, 2 * C:3 * C].reshape(C, n_hg, gw).transpose(1, 0, 2)
    wp = w_proj.reshape(n_hg, gw, C)

    cdt = compute_dtype
    x_c = x.astype(cdt)
    wq = wq.astype(cdt)
    wk = wk.astype(cdt)
    wv = wv.astype(cdt)
    wp = wp.astype(cdt)
    bp = b_proj.reshape(1, C).astype(jnp.float32)

    kernel = functools.partial(_mha_kernel, scale=scale, compute_dtype=cdt,
                               group=G, head_dim=hd)

    return pl.pallas_call(
        kernel,
        out_shape=jax.ShapeDtypeStruct((B, N, C), x.dtype),
        grid_spec=pltpu.PrefetchScalarGridSpec(
            num_scalar_prefetch=0,
            grid=(B, n_q, n_hg, n_k),
            in_specs=[
                pl.BlockSpec((1, tq, C), lambda b, qi, hg, ki: (b, qi, 0)),  # x (Q rows)
                pl.BlockSpec((1, tk, C), lambda b, qi, hg, ki: (b, ki, 0)),  # x (KV rows)
                pl.BlockSpec((1, C, gw), lambda b, qi, hg, ki: (hg, 0, 0)),  # Wq[group]
                pl.BlockSpec((1, C, gw), lambda b, qi, hg, ki: (hg, 0, 0)),  # Wk[group]
                pl.BlockSpec((1, C, gw), lambda b, qi, hg, ki: (hg, 0, 0)),  # Wv[group]
                pl.BlockSpec((1, gw, C), lambda b, qi, hg, ki: (hg, 0, 0)),  # Wproj[group]
                pl.BlockSpec((1, C), lambda b, qi, hg, ki: (0, 0)),          # bias
            ],
            # Output block index depends only on (b, qi) -> stays resident in
            # VMEM across the head-group and KV axes; we accumulate into it
            # directly (no separate y scratch).
            out_specs=pl.BlockSpec((1, tq, C), lambda b, qi, hg, ki: (b, qi, 0)),
            scratch_shapes=[
                pltpu.VMEM((tq, gw), cdt),          # resident scaled Q group
                pltpu.VMEM((tq, G), jnp.float32),   # per-head running max
                pltpu.VMEM((tq, G), jnp.float32),   # per-head running denominator
                pltpu.VMEM((tq, gw), jnp.float32),  # per-head running numerator
            ],
        ),
        compiler_params=pltpu.CompilerParams(
            dimension_semantics=("parallel", "parallel", "arbitrary", "arbitrary"),
            vmem_limit_bytes=48 * 1024 * 1024),   # fits v5e/v6e (128 MiB) and v7x (64 MiB)
    )(x_c, x_c, wq, wk, wv, wp, bp)


def _reference(x, w_qkv, w_proj, b_proj, num_heads=8):
    """Plain-JAX f32 reference mirroring the PyTorch forward exactly."""
    B, N, C = x.shape
    hd = C // num_heads
    scale = hd ** (-0.5)
    qkv = jnp.einsum("bnc,cd->bnd", x, w_qkv)                  # (B, N, 3C)
    qkv = qkv.reshape(B, N, 3, num_heads, hd).transpose(2, 0, 3, 1, 4)
    q, k, v = qkv[0], qkv[1], qkv[2]                           # (B, H, N, hd)
    attn = jnp.einsum("bhnd,bhmd->bhnm", q, k) * scale
    attn = jax.nn.softmax(attn, axis=-1)
    o = jnp.einsum("bhnm,bhmd->bhnd", attn, v)                 # (B, H, N, hd)
    o = o.transpose(0, 2, 1, 3).reshape(B, N, C)
    return jnp.einsum("bnc,cd->bnd", o, w_proj) + b_proj


def _make_params(key, C):
    kq, kp, kb = jax.random.split(key, 3)
    bound = 1.0 / math.sqrt(C)   # PyTorch Linear default init range
    w_qkv = jax.random.uniform(kq, (C, 3 * C), minval=-bound, maxval=bound,
                               dtype=jnp.float32)
    w_proj = jax.random.uniform(kp, (C, C), minval=-bound, maxval=bound,
                                dtype=jnp.float32)
    b_proj = jax.random.uniform(kb, (C,), minval=-bound, maxval=bound,
                                dtype=jnp.float32)
    return w_qkv, w_proj, b_proj


if __name__ == "__main__":
    key = jax.random.PRNGKey(0)

    # --- test 1: module-default toy shape (dim=32, num_heads=8 -> head_dim=4);
    #     all heads collapse into one group, single query/KV tile. ---
    B, N, C = 2, 8, 32
    k1, k2, key = jax.random.split(key, 3)
    x = jax.random.normal(k1, (B, N, C), dtype=jnp.float32)
    w_qkv, w_proj, b_proj = _make_params(k2, C)

    out = jax.block_until_ready(attention_forward(x, w_qkv, w_proj, b_proj))
    ref = _reference(x, w_qkv, w_proj, b_proj)
    assert out.shape == (B, N, C)
    assert jnp.allclose(out, ref, atol=5e-2, rtol=5e-2), (
        f"mismatch vs reference: max |err| = {jnp.max(jnp.abs(out - ref))}")

    # --- test 2: exercises multiple query tiles, multiple KV tiles AND the
    #     head-group reduction into the resident output block. ---
    B2, N2, C2 = 2, 64, 128
    k3, k4, key = jax.random.split(key, 3)
    x2 = jax.random.normal(k3, (B2, N2, C2), dtype=jnp.float32)
    w_qkv2, w_proj2, b_proj2 = _make_params(k4, C2)

    out2 = jax.block_until_ready(
        attention_forward(x2, w_qkv2, w_proj2, b_proj2,
                          tq=16, tk=16, head_group=2))
    ref2 = _reference(x2, w_qkv2, w_proj2, b_proj2)
    assert out2.shape == (B2, N2, C2)
    assert jnp.allclose(out2, ref2, atol=5e-2, rtol=5e-2), (
        f"mismatch vs reference: max |err| = {jnp.max(jnp.abs(out2 - ref2))}")

    print("KERNEL_OK")
</pallas_src>

<mosaic_0001>
module attributes {stable_mosaic.version = 11 : i64} {
  func.func @_mha_kernel(%arg0: i32, %arg1: i32, %arg2: i32, %arg3: i32, %arg4: memref<1x8x32xbf16, #tpu.memory_space<vmem>>, %arg5: memref<1x8x32xbf16, #tpu.memory_space<vmem>>, %arg6: memref<1x32x32xbf16, #tpu.memory_space<vmem>>, %arg7: memref<1x32x32xbf16, #tpu.memory_space<vmem>>, %arg8: memref<1x32x32xbf16, #tpu.memory_space<vmem>>, %arg9: memref<1x32x32xbf16, #tpu.memory_space<vmem>>, %arg10: memref<1x32xf32, #tpu.memory_space<vmem>>, %arg11: memref<1x8x32xf32, #tpu.memory_space<vmem>>, %arg12: memref<8x32xbf16, #tpu.memory_space<vmem>>, %arg13: memref<8x8xf32, #tpu.memory_space<vmem>>, %arg14: memref<8x8xf32, #tpu.memory_space<vmem>>, %arg15: memref<8x32xf32, #tpu.memory_space<vmem>>) attributes {dimension_semantics = [#tpu.dimension_semantics<parallel>, #tpu.dimension_semantics<parallel>, #tpu.dimension_semantics<arbitrary>, #tpu.dimension_semantics<arbitrary>], iteration_bounds = array<i64: 2, 1, 1, 1>, scalar_prefetch = 0 : i64, scratch_operands = 4 : i64, tpu.core_type = #tpu.core_type<tc>, window_params = [{transform_indices = @transform_0, window_bounds = array<i64: 1, 8, 32>}, {transform_indices = @transform_1, window_bounds = array<i64: 1, 8, 32>}, {transform_indices = @transform_2, window_bounds = array<i64: 1, 32, 32>}, {transform_indices = @transform_3, window_bounds = array<i64: 1, 32, 32>}, {transform_indices = @transform_4, window_bounds = array<i64: 1, 32, 32>}, {transform_indices = @transform_5, window_bounds = array<i64: 1, 32, 32>}, {pipeline_mode = #tpu.pipeline_mode<synchronous>, transform_indices = @transform_6, window_bounds = array<i64: 1, 32>}, {transform_indices = @transform_7, window_bounds = array<i64: 1, 8, 32>}]} {
    %c0_i32 = arith.constant 0 : i32
    %0 = arith.cmpi eq, %arg3, %c0_i32 : i32
    %1 = arith.extui %0 : i1 to i32
    %c0_i32_0 = arith.constant 0 : i32
    %2 = arith.cmpi ne, %1, %c0_i32_0 : i32
    scf.if %2 {
      %c0_143 = arith.constant 0 : index
      %c0_144 = arith.constant 0 : index
      %c0_145 = arith.constant 0 : index
      %232 = vector.load %arg4[%c0_143, %c0_144, %c0_145] : memref<1x8x32xbf16, #tpu.memory_space<vmem>>, vector<1x8x32xbf16>
      %233 = vector.shape_cast %232 : vector<1x8x32xbf16> to vector<8x32xbf16>
      %c0_146 = arith.constant 0 : index
      %c0_147 = arith.constant 0 : index
      %c0_148 = arith.constant 0 : index
      %234 = vector.load %arg6[%c0_146, %c0_147, %c0_148] : memref<1x32x32xbf16, #tpu.memory_space<vmem>>, vector<1x32x32xbf16>
      %235 = vector.shape_cast %234 : vector<1x32x32xbf16> to vector<32x32xbf16>
      %cst_149 = arith.constant dense<0.000000e+00> : vector<8x32xf32>
      %236 = tpu.matmul %233, %235, %cst_149 {dimension_numbers = #tpu.dot_dimension_numbers<[1], [0], [0], [1], [0, 0, 1, 1], [], []>} : vector<8x32xbf16>, vector<32x32xbf16>, vector<8x32xf32> -> vector<8x32xf32>
      %cst_150 = arith.constant 5.000000e-01 : f32
      %237 = vector.broadcast %cst_150 : f32 to vector<8x32xf32>
      %238 = arith.mulf %236, %237 : vector<8x32xf32>
      %239 = arith.truncf %238 : vector<8x32xf32> to vector<8x32xbf16>
      %c0_151 = arith.constant 0 : index
      %c0_152 = arith.constant 0 : index
      %240 = vector.load %arg12[%c0_151, %c0_152] : memref<8x32xbf16, #tpu.memory_space<vmem>>, vector<8x32xbf16>
      tpu.vector_store %arg12[%c0_151, %c0_152], %239 {strides = array<i32>} : memref<8x32xbf16, #tpu.memory_space<vmem>>, vector<8x32xbf16>,
      %cst_153 = arith.constant 0xFF800000 : f32
      %241 = vector.broadcast %cst_153 : f32 to vector<8x8xf32>
      %c0_154 = arith.constant 0 : index
      %c0_155 = arith.constant 0 : index
      %242 = vector.load %arg13[%c0_154, %c0_155] : memref<8x8xf32, #tpu.memory_space<vmem>>, vector<8x8xf32>
      tpu.vector_store %arg13[%c0_154, %c0_155], %241 {strides = array<i32>} : memref<8x8xf32, #tpu.memory_space<vmem>>, vector<8x8xf32>,
      %cst_156 = arith.constant 0.000000e+00 : f32
      %243 = vector.broadcast %cst_156 : f32 to vector<8x8xf32>
      %c0_157 = arith.constant 0 : index
      %c0_158 = arith.constant 0 : index
      %244 = vector.load %arg14[%c0_157, %c0_158] : memref<8x8xf32, #tpu.memory_space<vmem>>, vector<8x8xf32>
      tpu.vector_store %arg14[%c0_157, %c0_158], %243 {strides = array<i32>} : memref<8x8xf32, #tpu.memory_space<vmem>>, vector<8x8xf32>,
      %cst_159 = arith.constant 0.000000e+00 : f32
      %245 = vector.broadcast %cst_159 : f32 to vector<8x32xf32>
      %c0_160 = arith.constant 0 : index
      %c0_161 = arith.constant 0 : index
      %246 = vector.load %arg15[%c0_160, %c0_161] : memref<8x32xf32, #tpu.memory_space<vmem>>, vector<8x32xf32>
      tpu.vector_store %arg15[%c0_160, %c0_161], %245 {strides = array<i32>} : memref<8x32xf32, #tpu.memory_space<vmem>>, vector<8x32xf32>,
    } else {
    }
    %c0 = arith.constant 0 : index
    %c0_1 = arith.constant 0 : index
    %c0_2 = arith.constant 0 : index
    %3 = vector.load %arg5[%c0, %c0_1, %c0_2] : memref<1x8x32xbf16, #tpu.memory_space<vmem>>, vector<1x8x32xbf16>
    %4 = vector.shape_cast %3 : vector<1x8x32xbf16> to vector<8x32xbf16>
    %c0_3 = arith.constant 0 : index
    %c0_4 = arith.constant 0 : index
    %c0_5 = arith.constant 0 : index
    %5 = vector.load %arg7[%c0_3, %c0_4, %c0_5] : memref<1x32x32xbf16, #tpu.memory_space<vmem>>, vector<1x32x32xbf16>
    %6 = vector.shape_cast %5 : vector<1x32x32xbf16> to vector<32x32xbf16>
    %cst = arith.constant dense<0.000000e+00> : vector<8x32xf32>
    %7 = tpu.matmul %4, %6, %cst {dimension_numbers = #tpu.dot_dimension_numbers<[1], [0], [0], [1], [0, 0, 1, 1], [], []>} : vector<8x32xbf16>, vector<32x32xbf16>, vector<8x32xf32> -> vector<8x32xf32>
    %8 = arith.truncf %7 : vector<8x32xf32> to vector<8x32xbf16>
    %c0_6 = arith.constant 0 : index
    %c0_7 = arith.constant 0 : index
    %c0_8 = arith.constant 0 : index
    %9 = vector.load %arg8[%c0_6, %c0_7, %c0_8] : memref<1x32x32xbf16, #tpu.memory_space<vmem>>, vector<1x32x32xbf16>
    %10 = vector.shape_cast %9 : vector<1x32x32xbf16> to vector<32x32xbf16>
    %cst_9 = arith.constant dense<0.000000e+00> : vector<8x32xf32>
    %11 = tpu.matmul %4, %10, %cst_9 {dimension_numbers = #tpu.dot_dimension_numbers<[1], [0], [0], [1], [0, 0, 1, 1], [], []>} : vector<8x32xbf16>, vector<32x32xbf16>, vector<8x32xf32> -> vector<8x32xf32>
    %12 = arith.truncf %11 : vector<8x32xf32> to vector<8x32xbf16>
    %c0_10 = arith.constant 0 : index
    %c0_11 = arith.constant 0 : index
    %13 = vector.load %arg12[%c0_10, %c0_11] : memref<8x32xbf16, #tpu.memory_space<vmem>>, vector<8x4xbf16>
    %14 = vector.extract_strided_slice %8 {offsets = [0, 0], sizes = [8, 4], strides = [1, 1]} : vector<8x32xbf16> to vector<8x4xbf16>
    %15 = vector.extract_strided_slice %12 {offsets = [0, 0], sizes = [8, 4], strides = [1, 1]} : vector<8x32xbf16> to vector<8x4xbf16>
    %cst_12 = arith.constant dense<0.000000e+00> : vector<8x8xf32>
    %16 = tpu.matmul %13, %14, %cst_12 {dimension_numbers = #tpu.dot_dimension_numbers<[1], [1], [0], [0], [0, 0, 1, 0], [], []>} : vector<8x4xbf16>, vector<8x4xbf16>, vector<8x8xf32> -> vector<8x8xf32>
    %c0_13 = arith.constant 0 : index
    %c0_14 = arith.constant 0 : index
    %17 = vector.load %arg13[%c0_13, %c0_14] : memref<8x8xf32, #tpu.memory_space<vmem>>, vector<8x1xf32>
    %cst_15 = arith.constant dense<0xFF800000> : vector<8xf32>
    %18 = vector.multi_reduction <maximumf>, %16, %cst_15 [1] : vector<8x8xf32> to vector<8xf32>
    %19 = vector.shape_cast %18 : vector<8xf32> to vector<8x1xf32>
    %20 = arith.maximumf %17, %19 : vector<8x1xf32>
    %21 = arith.subf %17, %20 : vector<8x1xf32>
    %22 = math.exp %21 : vector<8x1xf32>
    %23 = vector.broadcast %20 : vector<8x1xf32> to vector<8x8xf32>
    %24 = arith.subf %16, %23 : vector<8x8xf32>
    %25 = math.exp %24 : vector<8x8xf32>
    %c0_16 = arith.constant 0 : index
    %c0_17 = arith.constant 0 : index
    %26 = vector.load %arg14[%c0_16, %c0_17] : memref<8x8xf32, #tpu.memory_space<vmem>>, vector<8x1xf32>
    %27 = arith.mulf %22, %26 : vector<8x1xf32>
    %cst_18 = arith.constant dense<0.000000e+00> : vector<8xf32>
    %28 = vector.multi_reduction <add>, %25, %cst_18 [1] : vector<8x8xf32> to vector<8xf32>
    %29 = vector.shape_cast %28 : vector<8xf32> to vector<8x1xf32>
    %30 = arith.addf %27, %29 : vector<8x1xf32>
    %c0_19 = arith.constant 0 : index
    %c0_20 = arith.constant 0 : index
    %31 = vector.load %arg14[%c0_19, %c0_20] : memref<8x8xf32, #tpu.memory_space<vmem>>, vector<8x1xf32>
    tpu.vector_store %arg14[%c0_19, %c0_20], %30 {strides = array<i32>} : memref<8x8xf32, #tpu.memory_space<vmem>>, vector<8x1xf32>,
    %c0_21 = arith.constant 0 : index
    %c0_22 = arith.constant 0 : index
    %32 = vector.load %arg15[%c0_21, %c0_22] : memref<8x32xf32, #tpu.memory_space<vmem>>, vector<8x4xf32>
    %33 = vector.broadcast %22 : vector<8x1xf32> to vector<8x4xf32>
    %34 = arith.mulf %33, %32 : vector<8x4xf32>
    %35 = arith.truncf %25 : vector<8x8xf32> to vector<8x8xbf16>
    %cst_23 = arith.constant dense<0.000000e+00> : vector<8x4xf32>
    %36 = tpu.matmul %35, %15, %cst_23 {dimension_numbers = #tpu.dot_dimension_numbers<[1], [0], [0], [1], [0, 0, 1, 1], [], []>} : vector<8x8xbf16>, vector<8x4xbf16>, vector<8x4xf32> -> vector<8x4xf32>
    %37 = arith.addf %34, %36 : vector<8x4xf32>
    %c0_24 = arith.constant 0 : index
    %c0_25 = arith.constant 0 : index
    %38 = vector.load %arg15[%c0_24, %c0_25] : memref<8x32xf32, #tpu.memory_space<vmem>>, vector<8x4xf32>
    tpu.vector_store %arg15[%c0_24, %c0_25], %37 {strides = array<i32>} : memref<8x32xf32, #tpu.memory_space<vmem>>, vector<8x4xf32>,
    %c0_26 = arith.constant 0 : index
    %c0_27 = arith.constant 0 : index
    %39 = vector.load %arg13[%c0_26, %c0_27] : memref<8x8xf32, #tpu.memory_space<vmem>>, vector<8x1xf32>
    tpu.vector_store %arg13[%c0_26, %c0_27], %20 {strides = array<i32>} : memref<8x8xf32, #tpu.memory_space<vmem>>, vector<8x1xf32>,
    %c0_28 = arith.constant 0 : index
    %c4 = arith.constant 4 : index
    %40 = vector.load %arg12[%c0_28, %c4] : memref<8x32xbf16, #tpu.memory_space<vmem>>, vector<8x4xbf16>
    %41 = vector.extract_strided_slice %8 {offsets = [0, 4], sizes = [8, 4], strides = [1, 1]} : vector<8x32xbf16> to vector<8x4xbf16>
    %42 = vector.extract_strided_slice %12 {offsets = [0, 4], sizes = [8, 4], strides = [1, 1]} : vector<8x32xbf16> to vector<8x4xbf16>
    %cst_29 = arith.constant dense<0.000000e+00> : vector<8x8xf32>
    %43 = tpu.matmul %40, %41, %cst_29 {dimension_numbers = #tpu.dot_dimension_numbers<[1], [1], [0], [0], [0, 0, 1, 0], [], []>} : vector<8x4xbf16>, vector<8x4xbf16>, vector<8x8xf32> -> vector<8x8xf32>
    %c0_30 = arith.constant 0 : index
    %c1 = arith.constant 1 : index
    %44 = vector.load %arg13[%c0_30, %c1] : memref<8x8xf32, #tpu.memory_space<vmem>>, vector<8x1xf32>
    %cst_31 = arith.constant dense<0xFF800000> : vector<8xf32>
    %45 = vector.multi_reduction <maximumf>, %43, %cst_31 [1] : vector<8x8xf32> to vector<8xf32>
    %46 = vector.shape_cast %45 : vector<8xf32> to vector<8x1xf32>
    %47 = arith.maximumf %44, %46 : vector<8x1xf32>
    %48 = arith.subf %44, %47 : vector<8x1xf32>
    %49 = math.exp %48 : vector<8x1xf32>
    %50 = vector.broadcast %47 : vector<8x1xf32> to vector<8x8xf32>
    %51 = arith.subf %43, %50 : vector<8x8xf32>
    %52 = math.exp %51 : vector<8x8xf32>
    %c0_32 = arith.constant 0 : index
    %c1_33 = arith.constant 1 : index
    %53 = vector.load %arg14[%c0_32, %c1_33] : memref<8x8xf32, #tpu.memory_space<vmem>>, vector<8x1xf32>
    %54 = arith.mulf %49, %53 : vector<8x1xf32>
    %cst_34 = arith.constant dense<0.000000e+00> : vector<8xf32>
    %55 = vector.multi_reduction <add>, %52, %cst_34 [1] : vector<8x8xf32> to vector<8xf32>
    %56 = vector.shape_cast %55 : vector<8xf32> to vector<8x1xf32>
    %57 = arith.addf %54, %56 : vector<8x1xf32>
    %c0_35 = arith.constant 0 : index
    %c1_36 = arith.constant 1 : index
    %58 = vector.load %arg14[%c0_35, %c1_36] : memref<8x8xf32, #tpu.memory_space<vmem>>, vector<8x1xf32>
    tpu.vector_store %arg14[%c0_35, %c1_36], %57 {strides = array<i32>} : memref<8x8xf32, #tpu.memory_space<vmem>>, vector<8x1xf32>,
    %c0_37 = arith.constant 0 : index
    %c4_38 = arith.constant 4 : index
    %59 = vector.load %arg15[%c0_37, %c4_38] : memref<8x32xf32, #tpu.memory_space<vmem>>, vector<8x4xf32>
    %60 = vector.broadcast %49 : vector<8x1xf32> to vector<8x4xf32>
    %61 = arith.mulf %60, %59 : vector<8x4xf32>
    %62 = arith.truncf %52 : vector<8x8xf32> to vector<8x8xbf16>
    %cst_39 = arith.constant dense<0.000000e+00> : vector<8x4xf32>
    %63 = tpu.matmul %62, %42, %cst_39 {dimension_numbers = #tpu.dot_dimension_numbers<[1], [0], [0], [1], [0, 0, 1, 1], [], []>} : vector<8x8xbf16>, vector<8x4xbf16>, vector<8x4xf32> -> vector<8x4xf32>
    %64 = arith.addf %61, %63 : vector<8x4xf32>
    %c0_40 = arith.constant 0 : index
    %c4_41 = arith.constant 4 : index
    %65 = vector.load %arg15[%c0_40, %c4_41] : memref<8x32xf32, #tpu.memory_space<vmem>>, vector<8x4xf32>
    tpu.vector_store %arg15[%c0_40, %c4_41], %64 {strides = array<i32>} : memref<8x32xf32, #tpu.memory_space<vmem>>, vector<8x4xf32>,
    %c0_42 = arith.constant 0 : index
    %c1_43 = arith.constant 1 : index
    %66 = vector.load %arg13[%c0_42, %c1_43] : memref<8x8xf32, #tpu.memory_space<vmem>>, vector<8x1xf32>
    tpu.vector_store %arg13[%c0_42, %c1_43], %47 {strides = array<i32>} : memref<8x8xf32, #tpu.memory_space<vmem>>, vector<8x1xf32>,
    %c0_44 = arith.constant 0 : index
    %c8 = arith.constant 8 : index
    %67 = vector.load %arg12[%c0_44, %c8] : memref<8x32xbf16, #tpu.memory_space<vmem>>, vector<8x4xbf16>
    %68 = vector.extract_strided_slice %8 {offsets = [0, 8], sizes = [8, 4], strides = [1, 1]} : vector<8x32xbf16> to vector<8x4xbf16>
    %69 = vector.extract_strided_slice %12 {offsets = [0, 8], sizes = [8, 4], strides = [1, 1]} : vector<8x32xbf16> to vector<8x4xbf16>
    %cst_45 = arith.constant dense<0.000000e+00> : vector<8x8xf32>
    %70 = tpu.matmul %67, %68, %cst_45 {dimension_numbers = #tpu.dot_dimension_numbers<[1], [1], [0], [0], [0, 0, 1, 0], [], []>} : vector<8x4xbf16>, vector<8x4xbf16>, vector<8x8xf32> -> vector<8x8xf32>
    %c0_46 = arith.constant 0 : index
    %c2 = arith.constant 2 : index
    %71 = vector.load %arg13[%c0_46, %c2] : memref<8x8xf32, #tpu.memory_space<vmem>>, vector<8x1xf32>
    %cst_47 = arith.constant dense<0xFF800000> : vector<8xf32>
    %72 = vector.multi_reduction <maximumf>, %70, %cst_47 [1] : vector<8x8xf32> to vector<8xf32>
    %73 = vector.shape_cast %72 : vector<8xf32> to vector<8x1xf32>
    %74 = arith.maximumf %71, %73 : vector<8x1xf32>
    %75 = arith.subf %71, %74 : vector<8x1xf32>
    %76 = math.exp %75 : vector<8x1xf32>
    %77 = vector.broadcast %74 : vector<8x1xf32> to vector<8x8xf32>
    %78 = arith.subf %70, %77 : vector<8x8xf32>
    %79 = math.exp %78 : vector<8x8xf32>
    %c0_48 = arith.constant 0 : index
    %c2_49 = arith.constant 2 : index
    %80 = vector.load %arg14[%c0_48, %c2_49] : memref<8x8xf32, #tpu.memory_space<vmem>>, vector<8x1xf32>
    %81 = arith.mulf %76, %80 : vector<8x1xf32>
    %cst_50 = arith.constant dense<0.000000e+00> : vector<8xf32>
    %82 = vector.multi_reduction <add>, %79, %cst_50 [1] : vector<8x8xf32> to vector<8xf32>
    %83 = vector.shape_cast %82 : vector<8xf32> to vector<8x1xf32>
    %84 = arith.addf %81, %83 : vector<8x1xf32>
    %c0_51 = arith.constant 0 : index
    %c2_52 = arith.constant 2 : index
    %85 = vector.load %arg14[%c0_51, %c2_52] : memref<8x8xf32, #tpu.memory_space<vmem>>, vector<8x1xf32>
    tpu.vector_store %arg14[%c0_51, %c2_52], %84 {strides = array<i32>} : memref<8x8xf32, #tpu.memory_space<vmem>>, vector<8x1xf32>,
    %c0_53 = arith.constant 0 : index
    %c8_54 = arith.constant 8 : index
    %86 = vector.load %arg15[%c0_53, %c8_54] : memref<8x32xf32, #tpu.memory_space<vmem>>, vector<8x4xf32>
    %87 = vector.broadcast %76 : vector<8x1xf32> to vector<8x4xf32>
    %88 = arith.mulf %87, %86 : vector<8x4xf32>
    %89 = arith.truncf %79 : vector<8x8xf32> to vector<8x8xbf16>
    %cst_55 = arith.constant dense<0.000000e+00> : vector<8x4xf32>
    %90 = tpu.matmul %89, %69, %cst_55 {dimension_numbers = #tpu.dot_dimension_numbers<[1], [0], [0], [1], [0, 0, 1, 1], [], []>} : vector<8x8xbf16>, vector<8x4xbf16>, vector<8x4xf32> -> vector<8x4xf32>
    %91 = arith.addf %88, %90 : vector<8x4xf32>
    %c0_56 = arith.constant 0 : index
    %c8_57 = arith.constant 8 : index
    %92 = vector.load %arg15[%c0_56, %c8_57] : memref<8x32xf32, #tpu.memory_space<vmem>>, vector<8x4xf32>
    tpu.vector_store %arg15[%c0_56, %c8_57], %91 {strides = array<i32>} : memref<8x32xf32, #tpu.memory_space<vmem>>, vector<8x4xf32>,
    %c0_58 = arith.constant 0 : index
    %c2_59 = arith.constant 2 : index
    %93 = vector.load %arg13[%c0_58, %c2_59] : memref<8x8xf32, #tpu.memory_space<vmem>>, vector<8x1xf32>
    tpu.vector_store %arg13[%c0_58, %c2_59], %74 {strides = array<i32>} : memref<8x8xf32, #tpu.memory_space<vmem>>, vector<8x1xf32>,
    %c0_60 = arith.constant 0 : index
    %c12 = arith.constant 12 : index
    %94 = vector.load %arg12[%c0_60, %c12] : memref<8x32xbf16, #tpu.memory_space<vmem>>, vector<8x4xbf16>
    %95 = vector.extract_strided_slice %8 {offsets = [0, 12], sizes = [8, 4], strides = [1, 1]} : vector<8x32xbf16> to vector<8x4xbf16>
    %96 = vector.extract_strided_slice %12 {offsets = [0, 12], sizes = [8, 4], strides = [1, 1]} : vector<8x32xbf16> to vector<8x4xbf16>
    %cst_61 = arith.constant dense<0.000000e+00> : vector<8x8xf32>
    %97 = tpu.matmul %94, %95, %cst_61 {dimension_numbers = #tpu.dot_dimension_numbers<[1], [1], [0], [0], [0, 0, 1, 0], [], []>} : vector<8x4xbf16>, vector<8x4xbf16>, vector<8x8xf32> -> vector<8x8xf32>
    %c0_62 = arith.constant 0 : index
    %c3 = arith.constant 3 : index
    %98 = vector.load %arg13[%c0_62, %c3] : memref<8x8xf32, #tpu.memory_space<vmem>>, vector<8x1xf32>
    %cst_63 = arith.constant dense<0xFF800000> : vector<8xf32>
    %99 = vector.multi_reduction <maximumf>, %97, %cst_63 [1] : vector<8x8xf32> to vector<8xf32>
    %100 = vector.shape_cast %99 : vector<8xf32> to vector<8x1xf32>
    %101 = arith.maximumf %98, %100 : vector<8x1xf32>
    %102 = arith.subf %98, %101 : vector<8x1xf32>
    %103 = math.exp %102 : vector<8x1xf32>
    %104 = vector.broadcast %101 : vector<8x1xf32> to vector<8x8xf32>
    %105 = arith.subf %97, %104 : vector<8x8xf32>
    %106 = math.exp %105 : vector<8x8xf32>
    %c0_64 = arith.constant 0 : index
    %c3_65 = arith.constant 3 : index
    %107 = vector.load %arg14[%c0_64, %c3_65] : memref<8x8xf32, #tpu.memory_space<vmem>>, vector<8x1xf32>
    %108 = arith.mulf %103, %107 : vector<8x1xf32>
    %cst_66 = arith.constant dense<0.000000e+00> : vector<8xf32>
    %109 = vector.multi_reduction <add>, %106, %cst_66 [1] : vector<8x8xf32> to vector<8xf32>
    %110 = vector.shape_cast %109 : vector<8xf32> to vector<8x1xf32>
    %111 = arith.addf %108, %110 : vector<8x1xf32>
    %c0_67 = arith.constant 0 : index
    %c3_68 = arith.constant 3 : index
    %112 = vector.load %arg14[%c0_67, %c3_68] : memref<8x8xf32, #tpu.memory_space<vmem>>, vector<8x1xf32>
    tpu.vector_store %arg14[%c0_67, %c3_68], %111 {strides = array<i32>} : memref<8x8xf32, #tpu.memory_space<vmem>>, vector<8x1xf32>,
    %c0_69 = arith.constant 0 : index
    %c12_70 = arith.constant 12 : index
    %113 = vector.load %arg15[%c0_69, %c12_70] : memref<8x32xf32, #tpu.memory_space<vmem>>, vector<8x4xf32>
    %114 = vector.broadcast %103 : vector<8x1xf32> to vector<8x4xf32>
    %115 = arith.mulf %114, %113 : vector<8x4xf32>
    %116 = arith.truncf %106 : vector<8x8xf32> to vector<8x8xbf16>
    %cst_71 = arith.constant dense<0.000000e+00> : vector<8x4xf32>
    %117 = tpu.matmul %116, %96, %cst_71 {dimension_numbers = #tpu.dot_dimension_numbers<[1], [0], [0], [1], [0, 0, 1, 1], [], []>} : vector<8x8xbf16>, vector<8x4xbf16>, vector<8x4xf32> -> vector<8x4xf32>
    %118 = arith.addf %115, %117 : vector<8x4xf32>
    %c0_72 = arith.constant 0 : index
    %c12_73 = arith.constant 12 : index
    %119 = vector.load %arg15[%c0_72, %c12_73] : memref<8x32xf32, #tpu.memory_space<vmem>>, vector<8x4xf32>
    tpu.vector_store %arg15[%c0_72, %c12_73], %118 {strides = array<i32>} : memref<8x32xf32, #tpu.memory_space<vmem>>, vector<8x4xf32>,
    %c0_74 = arith.constant 0 : index
    %c3_75 = arith.constant 3 : index
    %120 = vector.load %arg13[%c0_74, %c3_75] : memref<8x8xf32, #tpu.memory_space<vmem>>, vector<8x1xf32>
    tpu.vector_store %arg13[%c0_74, %c3_75], %101 {strides = array<i32>} : memref<8x8xf32, #tpu.memory_space<vmem>>, vector<8x1xf32>,
    %c0_76 = arith.constant 0 : index
    %c16 = arith.constant 16 : index
    %121 = vector.load %arg12[%c0_76, %c16] : memref<8x32xbf16, #tpu.memory_space<vmem>>, vector<8x4xbf16>
    %122 = vector.extract_strided_slice %8 {offsets = [0, 16], sizes = [8, 4], strides = [1, 1]} : vector<8x32xbf16> to vector<8x4xbf16>
    %123 = vector.extract_strided_slice %12 {offsets = [0, 16], sizes = [8, 4], strides = [1, 1]} : vector<8x32xbf16> to vector<8x4xbf16>
    %cst_77 = arith.constant dense<0.000000e+00> : vector<8x8xf32>
    %124 = tpu.matmul %121, %122, %cst_77 {dimension_numbers = #tpu.dot_dimension_numbers<[1], [1], [0], [0], [0, 0, 1, 0], [], []>} : vector<8x4xbf16>, vector<8x4xbf16>, vector<8x8xf32> -> vector<8x8xf32>
    %c0_78 = arith.constant 0 : index
    %c4_79 = arith.constant 4 : index
    %125 = vector.load %arg13[%c0_78, %c4_79] : memref<8x8xf32, #tpu.memory_space<vmem>>, vector<8x1xf32>
    %cst_80 = arith.constant dense<0xFF800000> : vector<8xf32>
    %126 = vector.multi_reduction <maximumf>, %124, %cst_80 [1] : vector<8x8xf32> to vector<8xf32>
    %127 = vector.shape_cast %126 : vector<8xf32> to vector<8x1xf32>
    %128 = arith.maximumf %125, %127 : vector<8x1xf32>
    %129 = arith.subf %125, %128 : vector<8x1xf32>
    %130 = math.exp %129 : vector<8x1xf32>
    %131 = vector.broadcast %128 : vector<8x1xf32> to vector<8x8xf32>
    %132 = arith.subf %124, %131 : vector<8x8xf32>
    %133 = math.exp %132 : vector<8x8xf32>
    %c0_81 = arith.constant 0 : index
    %c4_82 = arith.constant 4 : index
    %134 = vector.load %arg14[%c0_81, %c4_82] : memref<8x8xf32, #tpu.memory_space<vmem>>, vector<8x1xf32>
    %135 = arith.mulf %130, %134 : vector<8x1xf32>
    %cst_83 = arith.constant dense<0.000000e+00> : vector<8xf32>
    %136 = vector.multi_reduction <add>, %133, %cst_83 [1] : vector<8x8xf32> to vector<8xf32>
    %137 = vector.shape_cast %136 : vector<8xf32> to vector<8x1xf32>
    %138 = arith.addf %135, %137 : vector<8x1xf32>
    %c0_84 = arith.constant 0 : index
    %c4_85 = arith.constant 4 : index
    %139 = vector.load %arg14[%c0_84, %c4_85] : memref<8x8xf32, #tpu.memory_space<vmem>>, vector<8x1xf32>
    tpu.vector_store %arg14[%c0_84, %c4_85], %138 {strides = array<i32>} : memref<8x8xf32, #tpu.memory_space<vmem>>, vector<8x1xf32>,
    %c0_86 = arith.constant 0 : index
    %c16_87 = arith.constant 16 : index
    %140 = vector.load %arg15[%c0_86, %c16_87] : memref<8x32xf32, #tpu.memory_space<vmem>>, vector<8x4xf32>
    %141 = vector.broadcast %130 : vector<8x1xf32> to vector<8x4xf32>
    %142 = arith.mulf %141, %140 : vector<8x4xf32>
    %143 = arith.truncf %133 : vector<8x8xf32> to vector<8x8xbf16>
    %cst_88 = arith.constant dense<0.000000e+00> : vector<8x4xf32>
    %144 = tpu.matmul %143, %123, %cst_88 {dimension_numbers = #tpu.dot_dimension_numbers<[1], [0], [0], [1], [0, 0, 1, 1], [], []>} : vector<8x8xbf16>, vector<8x4xbf16>, vector<8x4xf32> -> vector<8x4xf32>
    %145 = arith.addf %142, %144 : vector<8x4xf32>
    %c0_89 = arith.constant 0 : index
    %c16_90 = arith.constant 16 : index
    %146 = vector.load %arg15[%c0_89, %c16_90] : memref<8x32xf32, #tpu.memory_space<vmem>>, vector<8x4xf32>
    tpu.vector_store %arg15[%c0_89, %c16_90], %145 {strides = array<i32>} : memref<8x32xf32, #tpu.memory_space<vmem>>, vector<8x4xf32>,
    %c0_91 = arith.constant 0 : index
    %c4_92 = arith.constant 4 : index
    %147 = vector.load %arg13[%c0_91, %c4_92] : memref<8x8xf32, #tpu.memory_space<vmem>>, vector<8x1xf32>
    tpu.vector_store %arg13[%c0_91, %c4_92], %128 {strides = array<i32>} : memref<8x8xf32, #tpu.memory_space<vmem>>, vector<8x1xf32>,
    %c0_93 = arith.constant 0 : index
    %c20 = arith.constant 20 : index
    %148 = vector.load %arg12[%c0_93, %c20] : memref<8x32xbf16, #tpu.memory_space<vmem>>, vector<8x4xbf16>
    %149 = vector.extract_strided_slice %8 {offsets = [0, 20], sizes = [8, 4], strides = [1, 1]} : vector<8x32xbf16> to vector<8x4xbf16>
    %150 = vector.extract_strided_slice %12 {offsets = [0, 20], sizes = [8, 4], strides = [1, 1]} : vector<8x32xbf16> to vector<8x4xbf16>
    %cst_94 = arith.constant dense<0.000000e+00> : vector<8x8xf32>
    %151 = tpu.matmul %148, %149, %cst_94 {dimension_numbers = #tpu.dot_dimension_numbers<[1], [1], [0], [0], [0, 0, 1, 0], [], []>} : vector<8x4xbf16>, vector<8x4xbf16>, vector<8x8xf32> -> vector<8x8xf32>
    %c0_95 = arith.constant 0 : index
    %c5 = arith.constant 5 : index
    %152 = vector.load %arg13[%c0_95, %c5] : memref<8x8xf32, #tpu.memory_space<vmem>>, vector<8x1xf32>
    %cst_96 = arith.constant dense<0xFF800000> : vector<8xf32>
    %153 = vector.multi_reduction <maximumf>, %151, %cst_96 [1] : vector<8x8xf32> to vector<8xf32>
    %154 = vector.shape_cast %153 : vector<8xf32> to vector<8x1xf32>
    %155 = arith.maximumf %152, %154 : vector<8x1xf32>
    %156 = arith.subf %152, %155 : vector<8x1xf32>
    %157 = math.exp %156 : vector<8x1xf32>
    %158 = vector.broadcast %155 : vector<8x1xf32> to vector<8x8xf32>
    %159 = arith.subf %151, %158 : vector<8x8xf32>
    %160 = math.exp %159 : vector<8x8xf32>
    %c0_97 = arith.constant 0 : index
    %c5_98 = arith.constant 5 : index
    %161 = vector.load %arg14[%c0_97, %c5_98] : memref<8x8xf32, #tpu.memory_space<vmem>>, vector<8x1xf32>
    %162 = arith.mulf %157, %161 : vector<8x1xf32>
    %cst_99 = arith.constant dense<0.000000e+00> : vector<8xf32>
    %163 = vector.multi_reduction <add>, %160, %cst_99 [1] : vector<8x8xf32> to vector<8xf32>
    %164 = vector.shape_cast %163 : vector<8xf32> to vector<8x1xf32>
    %165 = arith.addf %162, %164 : vector<8x1xf32>
    %c0_100 = arith.constant 0 : index
    %c5_101 = arith.constant 5 : index
    %166 = vector.load %arg14[%c0_100, %c5_101] : memref<8x8xf32, #tpu.memory_space<vmem>>, vector<8x1xf32>
    tpu.vector_store %arg14[%c0_100, %c5_101], %165 {strides = array<i32>} : memref<8x8xf32, #tpu.memory_space<vmem>>, vector<8x1xf32>,
    %c0_102 = arith.constant 0 : index
    %c20_103 = arith.constant 20 : index
    %167 = vector.load %arg15[%c0_102, %c20_103] : memref<8x32xf32, #tpu.memory_space<vmem>>, vector<8x4xf32>
    %168 = vector.broadcast %157 : vector<8x1xf32> to vector<8x4xf32>
    %169 = arith.mulf %168, %167 : vector<8x4xf32>
    %170 = arith.truncf %160 : vector<8x8xf32> to vector<8x8xbf16>
    %cst_104 = arith.constant dense<0.000000e+00> : vector<8x4xf32>
    %171 = tpu.matmul %170, %150, %cst_104 {dimension_numbers = #tpu.dot_dimension_numbers<[1], [0], [0], [1], [0, 0, 1, 1], [], []>} : vector<8x8xbf16>, vector<8x4xbf16>, vector<8x4xf32> -> vector<8x4xf32>
    %172 = arith.addf %169, %171 : vector<8x4xf32>
    %c0_105 = arith.constant 0 : index
    %c20_106 = arith.constant 20 : index
    %173 = vector.load %arg15[%c0_105, %c20_106] : memref<8x32xf32, #tpu.memory_space<vmem>>, vector<8x4xf32>
    tpu.vector_store %arg15[%c0_105, %c20_106], %172 {strides = array<i32>} : memref<8x32xf32, #tpu.memory_space<vmem>>, vector<8x4xf32>,
    %c0_107 = arith.constant 0 : index
    %c5_108 = arith.constant 5 : index
    %174 = vector.load %arg13[%c0_107, %c5_108] : memref<8x8xf32, #tpu.memory_space<vmem>>, vector<8x1xf32>
    tpu.vector_store %arg13[%c0_107, %c5_108], %155 {strides = array<i32>} : memref<8x8xf32, #tpu.memory_space<vmem>>, vector<8x1xf32>,
    %c0_109 = arith.constant 0 : index
    %c24 = arith.constant 24 : index
    %175 = vector.load %arg12[%c0_109, %c24] : memref<8x32xbf16, #tpu.memory_space<vmem>>, vector<8x4xbf16>
    %176 = vector.extract_strided_slice %8 {offsets = [0, 24], sizes = [8, 4], strides = [1, 1]} : vector<8x32xbf16> to vector<8x4xbf16>
    %177 = vector.extract_strided_slice %12 {offsets = [0, 24], sizes = [8, 4], strides = [1, 1]} : vector<8x32xbf16> to vector<8x4xbf16>
    %cst_110 = arith.constant dense<0.000000e+00> : vector<8x8xf32>
    %178 = tpu.matmul %175, %176, %cst_110 {dimension_numbers = #tpu.dot_dimension_numbers<[1], [1], [0], [0], [0, 0, 1, 0], [], []>} : vector<8x4xbf16>, vector<8x4xbf16>, vector<8x8xf32> -> vector<8x8xf32>
    %c0_111 = arith.constant 0 : index
    %c6 = arith.constant 6 : index
    %179 = vector.load %arg13[%c0_111, %c6] : memref<8x8xf32, #tpu.memory_space<vmem>>, vector<8x1xf32>
    %cst_112 = arith.constant dense<0xFF800000> : vector<8xf32>
    %180 = vector.multi_reduction <maximumf>, %178, %cst_112 [1] : vector<8x8xf32> to vector<8xf32>
    %181 = vector.shape_cast %180 : vector<8xf32> to vector<8x1xf32>
    %182 = arith.maximumf %179, %181 : vector<8x1xf32>
    %183 = arith.subf %179, %182 : vector<8x1xf32>
    %184 = math.exp %183 : vector<8x1xf32>
    %185 = vector.broadcast %182 : vector<8x1xf32> to vector<8x8xf32>
    %186 = arith.subf %178, %185 : vector<8x8xf32>
    %187 = math.exp %186 : vector<8x8xf32>
    %c0_113 = arith.constant 0 : index
    %c6_114 = arith.constant 6 : index
    %188 = vector.load %arg14[%c0_113, %c6_114] : memref<8x8xf32, #tpu.memory_space<vmem>>, vector<8x1xf32>
    %189 = arith.mulf %184, %188 : vector<8x1xf32>
    %cst_115 = arith.constant dense<0.000000e+00> : vector<8xf32>
    %190 = vector.multi_reduction <add>, %187, %cst_115 [1] : vector<8x8xf32> to vector<8xf32>
    %191 = vector.shape_cast %190 : vector<8xf32> to vector<8x1xf32>
    %192 = arith.addf %189, %191 : vector<8x1xf32>
    %c0_116 = arith.constant 0 : index
    %c6_117 = arith.constant 6 : index
    %193 = vector.load %arg14[%c0_116, %c6_117] : memref<8x8xf32, #tpu.memory_space<vmem>>, vector<8x1xf32>
    tpu.vector_store %arg14[%c0_116, %c6_117], %192 {strides = array<i32>} : memref<8x8xf32, #tpu.memory_space<vmem>>, vector<8x1xf32>,
    %c0_118 = arith.constant 0 : index
    %c24_119 = arith.constant 24 : index
    %194 = vector.load %arg15[%c0_118, %c24_119] : memref<8x32xf32, #tpu.memory_space<vmem>>, vector<8x4xf32>
    %195 = vector.broadcast %184 : vector<8x1xf32> to vector<8x4xf32>
    %196 = arith.mulf %195, %194 : vector<8x4xf32>
    %197 = arith.truncf %187 : vector<8x8xf32> to vector<8x8xbf16>
    %cst_120 = arith.constant dense<0.000000e+00> : vector<8x4xf32>
    %198 = tpu.matmul %197, %177, %cst_120 {dimension_numbers = #tpu.dot_dimension_numbers<[1], [0], [0], [1], [0, 0, 1, 1], [], []>} : vector<8x8xbf16>, vector<8x4xbf16>, vector<8x4xf32> -> vector<8x4xf32>
    %199 = arith.addf %196, %198 : vector<8x4xf32>
    %c0_121 = arith.constant 0 : index
    %c24_122 = arith.constant 24 : index
    %200 = vector.load %arg15[%c0_121, %c24_122] : memref<8x32xf32, #tpu.memory_space<vmem>>, vector<8x4xf32>
    tpu.vector_store %arg15[%c0_121, %c24_122], %199 {strides = array<i32>} : memref<8x32xf32, #tpu.memory_space<vmem>>, vector<8x4xf32>,
    %c0_123 = arith.constant 0 : index
    %c6_124 = arith.constant 6 : index
    %201 = vector.load %arg13[%c0_123, %c6_124] : memref<8x8xf32, #tpu.memory_space<vmem>>, vector<8x1xf32>
    tpu.vector_store %arg13[%c0_123, %c6_124], %182 {strides = array<i32>} : memref<8x8xf32, #tpu.memory_space<vmem>>, vector<8x1xf32>,
    %c0_125 = arith.constant 0 : index
    %c28 = arith.constant 28 : index
    %202 = vector.load %arg12[%c0_125, %c28] : memref<8x32xbf16, #tpu.memory_space<vmem>>, vector<8x4xbf16>
    %203 = vector.extract_strided_slice %8 {offsets = [0, 28], sizes = [8, 4], strides = [1, 1]} : vector<8x32xbf16> to vector<8x4xbf16>
    %204 = vector.extract_strided_slice %12 {offsets = [0, 28], sizes = [8, 4], strides = [1, 1]} : vector<8x32xbf16> to vector<8x4xbf16>
    %cst_126 = arith.constant dense<0.000000e+00> : vector<8x8xf32>
    %205 = tpu.matmul %202, %203, %cst_126 {dimension_numbers = #tpu.dot_dimension_numbers<[1], [1], [0], [0], [0, 0, 1, 0], [], []>} : vector<8x4xbf16>, vector<8x4xbf16>, vector<8x8xf32> -> vector<8x8xf32>
    %c0_127 = arith.constant 0 : index
    %c7 = arith.constant 7 : index
    %206 = vector.load %arg13[%c0_127, %c7] : memref<8x8xf32, #tpu.memory_space<vmem>>, vector<8x1xf32>
    %cst_128 = arith.constant dense<0xFF800000> : vector<8xf32>
    %207 = vector.multi_reduction <maximumf>, %205, %cst_128 [1] : vector<8x8xf32> to vector<8xf32>
    %208 = vector.shape_cast %207 : vector<8xf32> to vector<8x1xf32>
    %209 = arith.maximumf %206, %208 : vector<8x1xf32>
    %210 = arith.subf %206, %209 : vector<8x1xf32>
    %211 = math.exp %210 : vector<8x1xf32>
    %212 = vector.broadcast %209 : vector<8x1xf32> to vector<8x8xf32>
    %213 = arith.subf %205, %212 : vector<8x8xf32>
    %214 = math.exp %213 : vector<8x8xf32>
    %c0_129 = arith.constant 0 : index
    %c7_130 = arith.constant 7 : index
    %215 = vector.load %arg14[%c0_129, %c7_130] : memref<8x8xf32, #tpu.memory_space<vmem>>, vector<8x1xf32>
    %216 = arith.mulf %211, %215 : vector<8x1xf32>
    %cst_131 = arith.constant dense<0.000000e+00> : vector<8xf32>
    %217 = vector.multi_reduction <add>, %214, %cst_131 [1] : vector<8x8xf32> to vector<8xf32>
    %218 = vector.shape_cast %217 : vector<8xf32> to vector<8x1xf32>
    %219 = arith.addf %216, %218 : vector<8x1xf32>
    %c0_132 = arith.constant 0 : index
    %c7_133 = arith.constant 7 : index
    %220 = vector.load %arg14[%c0_132, %c7_133] : memref<8x8xf32, #tpu.memory_space<vmem>>, vector<8x1xf32>
    tpu.vector_store %arg14[%c0_132, %c7_133], %219 {strides = array<i32>} : memref<8x8xf32, #tpu.memory_space<vmem>>, vector<8x1xf32>,
    %c0_134 = arith.constant 0 : index
    %c28_135 = arith.constant 28 : index
    %221 = vector.load %arg15[%c0_134, %c28_135] : memref<8x32xf32, #tpu.memory_space<vmem>>, vector<8x4xf32>
    %222 = vector.broadcast %211 : vector<8x1xf32> to vector<8x4xf32>
    %223 = arith.mulf %222, %221 : vector<8x4xf32>
    %224 = arith.truncf %214 : vector<8x8xf32> to vector<8x8xbf16>
    %cst_136 = arith.constant dense<0.000000e+00> : vector<8x4xf32>
    %225 = tpu.matmul %224, %204, %cst_136 {dimension_numbers = #tpu.dot_dimension_numbers<[1], [0], [0], [1], [0, 0, 1, 1], [], []>} : vector<8x8xbf16>, vector<8x4xbf16>, vector<8x4xf32> -> vector<8x4xf32>
    %226 = arith.addf %223, %225 : vector<8x4xf32>
    %c0_137 = arith.constant 0 : index
    %c28_138 = arith.constant 28 : index
    %227 = vector.load %arg15[%c0_137, %c28_138] : memref<8x32xf32, #tpu.memory_space<vmem>>, vector<8x4xf32>
    tpu.vector_store %arg15[%c0_137, %c28_138], %226 {strides = array<i32>} : memref<8x32xf32, #tpu.memory_space<vmem>>, vector<8x4xf32>,
    %c0_139 = arith.constant 0 : index
    %c7_140 = arith.constant 7 : index
    %228 = vector.load %arg13[%c0_139, %c7_140] : memref<8x8xf32, #tpu.memory_space<vmem>>, vector<8x1xf32>
    tpu.vector_store %arg13[%c0_139, %c7_140], %209 {strides = array<i32>} : memref<8x8xf32, #tpu.memory_space<vmem>>, vector<8x1xf32>,
    %c0_i32_141 = arith.constant 0 : i32
    %229 = arith.cmpi eq, %arg3, %c0_i32_141 : i32
    %230 = arith.extui %229 : i1 to i32
    %c0_i32_142 = arith.constant 0 : i32
    %231 = arith.cmpi ne, %230, %c0_i32_142 : i32
    scf.if %231 {
      %c0_143 = arith.constant 0 : index
      %c0_144 = arith.constant 0 : index
      %232 = vector.load %arg14[%c0_143, %c0_144] : memref<8x8xf32, #tpu.memory_space<vmem>>, vector<8x1xf32>
      %233 = tpu.reciprocal %232 {approx = true} : vector<8x1xf32> -> vector<8x1xf32>
      %c0_145 = arith.constant 0 : index
      %c0_146 = arith.constant 0 : index
      %234 = vector.load %arg15[%c0_145, %c0_146] : memref<8x32xf32, #tpu.memory_space<vmem>>, vector<8x4xf32>
      %235 = vector.broadcast %233 : vector<8x1xf32> to vector<8x4xf32>
      %236 = arith.mulf %234, %235 : vector<8x4xf32>
      %c0_147 = arith.constant 0 : index
      %c0_148 = arith.constant 0 : index
      %237 = vector.load %arg15[%c0_147, %c0_148] : memref<8x32xf32, #tpu.memory_space<vmem>>, vector<8x4xf32>
      tpu.vector_store %arg15[%c0_147, %c0_148], %236 {strides = array<i32>} : memref<8x32xf32, #tpu.memory_space<vmem>>, vector<8x4xf32>,
      %c0_149 = arith.constant 0 : index
      %c1_150 = arith.constant 1 : index
      %238 = vector.load %arg14[%c0_149, %c1_150] : memref<8x8xf32, #tpu.memory_space<vmem>>, vector<8x1xf32>
      %239 = tpu.reciprocal %238 {approx = true} : vector<8x1xf32> -> vector<8x1xf32>
      %c0_151 = arith.constant 0 : index
      %c4_152 = arith.constant 4 : index
      %240 = vector.load %arg15[%c0_151, %c4_152] : memref<8x32xf32, #tpu.memory_space<vmem>>, vector<8x4xf32>
      %241 = vector.broadcast %239 : vector<8x1xf32> to vector<8x4xf32>
      %242 = arith.mulf %240, %241 : vector<8x4xf32>
      %c0_153 = arith.constant 0 : index
      %c4_154 = arith.constant 4 : index
      %243 = vector.load %arg15[%c0_153, %c4_154] : memref<8x32xf32, #tpu.memory_space<vmem>>, vector<8x4xf32>
      tpu.vector_store %arg15[%c0_153, %c4_154], %242 {strides = array<i32>} : memref<8x32xf32, #tpu.memory_space<vmem>>, vector<8x4xf32>,
      %c0_155 = arith.constant 0 : index
      %c2_156 = arith.constant 2 : index
      %244 = vector.load %arg14[%c0_155, %c2_156] : memref<8x8xf32, #tpu.memory_space<vmem>>, vector<8x1xf32>
      %245 = tpu.reciprocal %244 {approx = true} : vector<8x1xf32> -> vector<8x1xf32>
      %c0_157 = arith.constant 0 : index
      %c8_158 = arith.constant 8 : index
      %246 = vector.load %arg15[%c0_157, %c8_158] : memref<8x32xf32, #tpu.memory_space<vmem>>, vector<8x4xf32>
      %247 = vector.broadcast %245 : vector<8x1xf32> to vector<8x4xf32>
      %248 = arith.mulf %246, %247 : vector<8x4xf32>
      %c0_159 = arith.constant 0 : index
      %c8_160 = arith.constant 8 : index
      %249 = vector.load %arg15[%c0_159, %c8_160] : memref<8x32xf32, #tpu.memory_space<vmem>>, vector<8x4xf32>
      tpu.vector_store %arg15[%c0_159, %c8_160], %248 {strides = array<i32>} : memref<8x32xf32, #tpu.memory_space<vmem>>, vector<8x4xf32>,
      %c0_161 = arith.constant 0 : index
      %c3_162 = arith.constant 3 : index
      %250 = vector.load %arg14[%c0_161, %c3_162] : memref<8x8xf32, #tpu.memory_space<vmem>>, vector<8x1xf32>
      %251 = tpu.reciprocal %250 {approx = true} : vector<8x1xf32> -> vector<8x1xf32>
      %c0_163 = arith.constant 0 : index
      %c12_164 = arith.constant 12 : index
      %252 = vector.load %arg15[%c0_163, %c12_164] : memref<8x32xf32, #tpu.memory_space<vmem>>, vector<8x4xf32>
      %253 = vector.broadcast %251 : vector<8x1xf32> to vector<8x4xf32>
      %254 = arith.mulf %252, %253 : vector<8x4xf32>
      %c0_165 = arith.constant 0 : index
      %c12_166 = arith.constant 12 : index
      %255 = vector.load %arg15[%c0_165, %c12_166] : memref<8x32xf32, #tpu.memory_space<vmem>>, vector<8x4xf32>
      tpu.vector_store %arg15[%c0_165, %c12_166], %254 {strides = array<i32>} : memref<8x32xf32, #tpu.memory_space<vmem>>, vector<8x4xf32>,
      %c0_167 = arith.constant 0 : index
      %c4_168 = arith.constant 4 : index
      %256 = vector.load %arg14[%c0_167, %c4_168] : memref<8x8xf32, #tpu.memory_space<vmem>>, vector<8x1xf32>
      %257 = tpu.reciprocal %256 {approx = true} : vector<8x1xf32> -> vector<8x1xf32>
      %c0_169 = arith.constant 0 : index
      %c16_170 = arith.constant 16 : index
      %258 = vector.load %arg15[%c0_169, %c16_170] : memref<8x32xf32, #tpu.memory_space<vmem>>, vector<8x4xf32>
      %259 = vector.broadcast %257 : vector<8x1xf32> to vector<8x4xf32>
      %260 = arith.mulf %258, %259 : vector<8x4xf32>
      %c0_171 = arith.constant 0 : index
      %c16_172 = arith.constant 16 : index
      %261 = vector.load %arg15[%c0_171, %c16_172] : memref<8x32xf32, #tpu.memory_space<vmem>>, vector<8x4xf32>
      tpu.vector_store %arg15[%c0_171, %c16_172], %260 {strides = array<i32>} : memref<8x32xf32, #tpu.memory_space<vmem>>, vector<8x4xf32>,
      %c0_173 = arith.constant 0 : index
      %c5_174 = arith.constant 5 : index
      %262 = vector.load %arg14[%c0_173, %c5_174] : memref<8x8xf32, #tpu.memory_space<vmem>>, vector<8x1xf32>
      %263 = tpu.reciprocal %262 {approx = true} : vector<8x1xf32> -> vector<8x1xf32>
      %c0_175 = arith.constant 0 : index
      %c20_176 = arith.constant 20 : index
      %264 = vector.load %arg15[%c0_175, %c20_176] : memref<8x32xf32, #tpu.memory_space<vmem>>, vector<8x4xf32>
      %265 = vector.broadcast %263 : vector<8x1xf32> to vector<8x4xf32>
      %266 = arith.mulf %264, %265 : vector<8x4xf32>
      %c0_177 = arith.constant 0 : index
      %c20_178 = arith.constant 20 : index
      %267 = vector.load %arg15[%c0_177, %c20_178] : memref<8x32xf32, #tpu.memory_space<vmem>>, vector<8x4xf32>
      tpu.vector_store %arg15[%c0_177, %c20_178], %266 {strides = array<i32>} : memref<8x32xf32, #tpu.memory_space<vmem>>, vector<8x4xf32>,
      %c0_179 = arith.constant 0 : index
      %c6_180 = arith.constant 6 : index
      %268 = vector.load %arg14[%c0_179, %c6_180] : memref<8x8xf32, #tpu.memory_space<vmem>>, vector<8x1xf32>
      %269 = tpu.reciprocal %268 {approx = true} : vector<8x1xf32> -> vector<8x1xf32>
      %c0_181 = arith.constant 0 : index
      %c24_182 = arith.constant 24 : index
      %270 = vector.load %arg15[%c0_181, %c24_182] : memref<8x32xf32, #tpu.memory_space<vmem>>, vector<8x4xf32>
      %271 = vector.broadcast %269 : vector<8x1xf32> to vector<8x4xf32>
      %272 = arith.mulf %270, %271 : vector<8x4xf32>
      %c0_183 = arith.constant 0 : index
      %c24_184 = arith.constant 24 : index
      %273 = vector.load %arg15[%c0_183, %c24_184] : memref<8x32xf32, #tpu.memory_space<vmem>>, vector<8x4xf32>
      tpu.vector_store %arg15[%c0_183, %c24_184], %272 {strides = array<i32>} : memref<8x32xf32, #tpu.memory_space<vmem>>, vector<8x4xf32>,
      %c0_185 = arith.constant 0 : index
      %c7_186 = arith.constant 7 : index
      %274 = vector.load %arg14[%c0_185, %c7_186] : memref<8x8xf32, #tpu.memory_space<vmem>>, vector<8x1xf32>
      %275 = tpu.reciprocal %274 {approx = true} : vector<8x1xf32> -> vector<8x1xf32>
      %c0_187 = arith.constant 0 : index
      %c28_188 = arith.constant 28 : index
      %276 = vector.load %arg15[%c0_187, %c28_188] : memref<8x32xf32, #tpu.memory_space<vmem>>, vector<8x4xf32>
      %277 = vector.broadcast %275 : vector<8x1xf32> to vector<8x4xf32>
      %278 = arith.mulf %276, %277 : vector<8x4xf32>
      %c0_189 = arith.constant 0 : index
      %c28_190 = arith.constant 28 : index
      %279 = vector.load %arg15[%c0_189, %c28_190] : memref<8x32xf32, #tpu.memory_space<vmem>>, vector<8x4xf32>
      tpu.vector_store %arg15[%c0_189, %c28_190], %278 {strides = array<i32>} : memref<8x32xf32, #tpu.memory_space<vmem>>, vector<8x4xf32>,
      %c0_191 = arith.constant 0 : index
      %c0_192 = arith.constant 0 : index
      %280 = vector.load %arg15[%c0_191, %c0_192] : memref<8x32xf32, #tpu.memory_space<vmem>>, vector<8x32xf32>
      %281 = arith.truncf %280 : vector<8x32xf32> to vector<8x32xbf16>
      %c0_193 = arith.constant 0 : index
      %c0_194 = arith.constant 0 : index
      %c0_195 = arith.constant 0 : index
      %282 = vector.load %arg9[%c0_193, %c0_194, %c0_195] : memref<1x32x32xbf16, #tpu.memory_space<vmem>>, vector<1x32x32xbf16>
      %283 = vector.shape_cast %282 : vector<1x32x32xbf16> to vector<32x32xbf16>
      %cst_196 = arith.constant dense<0.000000e+00> : vector<8x32xf32>
      %284 = tpu.matmul %281, %283, %cst_196 {dimension_numbers = #tpu.dot_dimension_numbers<[1], [0], [0], [1], [0, 0, 1, 1], [], []>} : vector<8x32xbf16>, vector<32x32xbf16>, vector<8x32xf32> -> vector<8x32xf32>
      %c0_i32_197 = arith.constant 0 : i32
      %285 = arith.cmpi eq, %arg2, %c0_i32_197 : i32
      %286 = arith.extui %285 : i1 to i32
      %c0_i32_198 = arith.constant 0 : i32
      %287 = arith.cmpi ne, %286, %c0_i32_198 : i32
      scf.if %287 {
        %c0_201 = arith.constant 0 : index
        %c0_202 = arith.constant 0 : index
        %291 = vector.load %arg10[%c0_201, %c0_202] : memref<1x32xf32, #tpu.memory_space<vmem>>, vector<1x32xf32>
        %292 = vector.broadcast %291 : vector<1x32xf32> to vector<8x32xf32>
        %293 = arith.addf %284, %292 : vector<8x32xf32>
        %c0_203 = arith.constant 0 : index
        %c0_204 = arith.constant 0 : index
        %c0_205 = arith.constant 0 : index
        %294 = vector.load %arg11[%c0_203, %c0_204, %c0_205] : memref<1x8x32xf32, #tpu.memory_space<vmem>>, vector<1x8x32xf32>
        %295 = vector.shape_cast %294 : vector<1x8x32xf32> to vector<8x32xf32>
        %296 = vector.shape_cast %293 : vector<8x32xf32> to vector<1x8x32xf32>
        tpu.vector_store %arg11[%c0_203, %c0_204, %c0_205], %296 {strides = array<i32>} : memref<1x8x32xf32, #tpu.memory_space<vmem>>, vector<1x8x32xf32>,
      } else {
      }
      %c0_i32_199 = arith.constant 0 : i32
      %288 = arith.cmpi ne, %arg2, %c0_i32_199 : i32
      %289 = arith.extui %288 : i1 to i32
      %c0_i32_200 = arith.constant 0 : i32
      %290 = arith.cmpi ne, %289, %c0_i32_200 : i32
      scf.if %290 {
        %c0_201 = arith.constant 0 : index
        %c0_202 = arith.constant 0 : index
        %c0_203 = arith.constant 0 : index
        %291 = vector.load %arg11[%c0_201, %c0_202, %c0_203] : memref<1x8x32xf32, #tpu.memory_space<vmem>>, vector<1x8x32xf32>
        %292 = vector.shape_cast %291 : vector<1x8x32xf32> to vector<8x32xf32>
        %293 = arith.addf %292, %284 : vector<8x32xf32>
        %c0_204 = arith.constant 0 : index
        %c0_205 = arith.constant 0 : index
        %c0_206 = arith.constant 0 : index
        %294 = vector.load %arg11[%c0_204, %c0_205, %c0_206] : memref<1x8x32xf32, #tpu.memory_space<vmem>>, vector<1x8x32xf32>
        %295 = vector.shape_cast %294 : vector<1x8x32xf32> to vector<8x32xf32>
        %296 = vector.shape_cast %293 : vector<8x32xf32> to vector<1x8x32xf32>
        tpu.vector_store %arg11[%c0_204, %c0_205, %c0_206], %296 {strides = array<i32>} : memref<1x8x32xf32, #tpu.memory_space<vmem>>, vector<1x8x32xf32>,
      } else {
      }
    } else {
    }
    return
  }
  func.func @transform_0(%arg0: i32, %arg1: i32, %arg2: i32, %arg3: i32) -> (i32, i32, i32) {
    %c0_i32 = arith.constant 0 : i32
    %c0_i32_0 = arith.constant 0 : i32
    return %arg0, %arg1, %c0_i32 : i32, i32, i32
  }
  func.func @transform_1(%arg0: i32, %arg1: i32, %arg2: i32, %arg3: i32) -> (i32, i32, i32) {
    %c0_i32 = arith.constant 0 : i32
    %c0_i32_0 = arith.constant 0 : i32
    return %arg0, %arg3, %c0_i32 : i32, i32, i32
  }
  func.func @transform_2(%arg0: i32, %arg1: i32, %arg2: i32, %arg3: i32) -> (i32, i32, i32) {
    %c0_i32 = arith.constant 0 : i32
    %c0_i32_0 = arith.constant 0 : i32
    %c0_i32_1 = arith.constant 0 : i32
    return %arg2, %c0_i32, %c0_i32_0 : i32, i32, i32
  }
  func.func @transform_3(%arg0: i32, %arg1: i32, %arg2: i32, %arg3: i32) -> (i32, i32, i32) {
    %c0_i32 = arith.constant 0 : i32
    %c0_i32_0 = arith.constant 0 : i32
    %c0_i32_1 = arith.constant 0 : i32
    return %arg2, %c0_i32, %c0_i32_0 : i32, i32, i32
  }
  func.func @transform_4(%arg0: i32, %arg1: i32, %arg2: i32, %arg3: i32) -> (i32, i32, i32) {
    %c0_i32 = arith.constant 0 : i32
    %c0_i32_0 = arith.constant 0 : i32
    %c0_i32_1 = arith.constant 0 : i32
    return %arg2, %c0_i32, %c0_i32_0 : i32, i32, i32
  }
  func.func @transform_5(%arg0: i32, %arg1: i32, %arg2: i32, %arg3: i32) -> (i32, i32, i32) {
    %c0_i32 = arith.constant 0 : i32
    %c0_i32_0 = arith.constant 0 : i32
    %c0_i32_1 = arith.constant 0 : i32
    return %arg2, %c0_i32, %c0_i32_0 : i32, i32, i32
  }
  func.func @transform_6(%arg0: i32, %arg1: i32, %arg2: i32, %arg3: i32) -> (i32, i32) {
    %c0_i32 = arith.constant 0 : i32
    %c0_i32_0 = arith.constant 0 : i32
    %c0_i32_1 = arith.constant 0 : i32
    return %c0_i32, %c0_i32_0 : i32, i32
  }
  func.func @transform_7(%arg0: i32, %arg1: i32, %arg2: i32, %arg3: i32) -> (i32, i32, i32) {
    %c0_i32 = arith.constant 0 : i32
    %c0_i32_0 = arith.constant 0 : i32
    return %arg0, %arg1, %c0_i32 : i32, i32, i32
  }
}

</mosaic_0001>

<bundles_post_ra>
// kernel: tpu_custom_call.1
= control target key start
LH: loop header
LB: loop body
LE: loop exit
PB: predicated region body
PF: predicated region fallthrough
CT: control target
= control target key end

     0   :  { %s3519_s0 = inlined_call_operand.hbm [shape: bf16[2,8,32], index: 0, kind: input, shape index: {}]   ;;  %s3520_s1 = inlined_call_operand.hbm [shape: bf16[2,8,32], index: 1, kind: input, shape index: {}]   ;;  %s3521_s2 = inlined_call_operand.hbm [shape: bf16[1,32,32], index: 2, kind: input, shape index: {}]   ;;  %s3522_s3 = inlined_call_operand.hbm [shape: bf16[1,32,32], index: 3, kind: input, shape index: {}]   ;;  %s3523_s4 = inlined_call_operand.hbm [shape: bf16[1,32,32], index: 4, kind: input, shape index: {}]   ;;  %s3524_s5 = inlined_call_operand.vmem [shape: bf16[1,32,32], index: 5, kind: input, shape index: {}]   ;;  %s3525_s6 = inlined_call_operand.vmem [shape: f32[1,32], index: 6, kind: input, shape index: {}]   ;;  %s3526_s7 = inlined_call_operand.hbm [shape: f32[2,8,32], index: 7, kind: output, shape index: {}]  }
   0x1   :  { %3534 = sst [smem:[#allocation23_spill]] %s3521_s2 }
   0x2   :  { %3535 = sst [smem:[#allocation24_spill]] %s3522_s3 }
   0x3   :  { %3536 = sst [smem:[#allocation25_spill]] %s3523_s4 }
   0x4   :  { %3537 = sst [smem:[#allocation26_spill]] %s3526_s7 }
   0x5   :  { %12 = vsyncpa [#allocation7], 0 }
   0x6   :  { %14 = vsyncpa [#allocation7 + $0x1], 0 }
   0x7   :  { %15 = vsyncpa [#allocation10], 0 }
   0x8   :  { %17 = vsyncpa [#allocation10 + $0x1], 0 }
   0x9   :  { %18 = vsyncpa [#allocation13], 0 }
   0xa   :  { %19 = vsyncpa [#allocation8], 0 }
   0xb   :  { %21 = vsyncpa [#allocation8 + $0x1], 0  ;;  %s2852_s24 = smov 0   ;;  %s2854_s25 = smov 0  }
   0xc   :  { %s2856_s26 = smov 0   ;;  %s2858_s27 = smov 0  }
   0xd   :  { %s2860_s28 = smov 0   ;;  %s2862_s29 = smov 0  }
   0xe LB: > { %3538 = sst [smem:[#allocation21_spill]] %s2757_s24  ;;  %s2883_s30 = sadd.s32 4294967295, %s2777_s29   ;;  %s2777_s29 = sphi %s2862_s29, %s27_s29   ;;  %s2773_s28 = sphi %s2860_s28, %s3567_s28   ;;  %s2769_s27 = sphi %s2858_s27, %s3566_s27   ;;  %s2765_s26 = sphi %s2856_s26, %s3565_s26   ;;  %s2761_s25 = sphi %s2854_s25, %s3564_s25   ;;  %s2757_s24 = sphi %s2852_s24, %s3563_s24  }
   0xf   : > { %s2111_s8 = sadd.s32 4294967294, %s2777_s29   ;;  %p75_p0 = scmp.ne.s32.totalorder %s2761_s25, %s2757_s24 }
  0x10   : > { %p3527_p1 = scmp.eq.s32.totalorder %s2883_s30, 0  ;;  %p260_p3 = scmp.eq.s32.totalorder %s2111_s8, 1 }
  0x11   : > { %p2112_p5 = scmp.ge.s32.totalorder %s2777_s29, 1  ;;  %p267_p7 = scmp.lt.s32.totalorder %s2777_s29, 3 }
  0x12   : > { %p2892_p4 = por %p3527_p1, %p75_p0  ;;  %p2897_p6 = por %p260_p3, %p75_p0 }
  0x13   : > { %p2902_p8 = pnand %p2112_p5, %p267_p7  ;;  %s2779_s12 = smov [#allocation11]  }
  0x14   : > { %s3539_s9 = scalar_select %p2892_p4, 1, 0 }
  0x15   : > { %s3540_s10 = scalar_select %p2897_p6, 1, 0 }
  0x16   : > { %s3542_s11 = scalar_select %p2902_p8, 1, 0 }
  0x17   : > { %3541 = sst [smem:[#allocation22_spill]] %s3540_s10  ;;  %s282_s13 = sshll.u32 %s2779_s12, 4  ;;  %s2906_s13 = int_to_ptr.vmem [resolvable:$true] %s282_s13 }
  0x18   : > { %p2359_p9 = pneg %p2902_p8  ;;  %s2780_s15 = smov [#allocation12]  }
  0x19   : > { %s298_s16 = sshll.u32 %s2780_s15, 4  ;;  %s2781_s17 = smov [#allocation14]   ;;  %s2917_s16 = int_to_ptr.vmem [resolvable:$true] %s298_s16 }
  0x1a   : > { %p2913_p11 = pnand %p2359_p9, %p3527_p1  ;;  %s2919_s18 = sshll.u32 %s2781_s17, 4  ;;  %s315_s18 = int_to_ptr.vmem [resolvable:$true] %s2919_s18 }
  0x1b   : > { %s3544_s2 = sld [smem:[#allocation23_spill]] }
  0x1c   : > { %p2929_p13 = pneg %p2913_p11 }
  0x21   : > { %s2539_s21 = scalar_lea.hbm %s3544_s2, 256 }
  0x22   : > { %p2540_p12 = scmp.ne.s32.totalorder %s3544_s2, %s2539_s21  ;;  %p2546_p5 = scmp.lt.u32.totalorder %s2539_s21, %s3544_s2 }
  0x24   : > { %p2542_p0 = pnand %p2929_p13, %p2540_p12 }
  0x26   : > { %p2543_p3 = pneg %p2542_p0 }
  0x28   : > { %p2548_p7 = pnand %p2546_p5, %p2543_p3 }
  0x2a   : > { %2551 = shalt.err (!%p2548_p7)
}
  0x2b   : > { %s2552_s17 = scalar_lea.vmem %s2906_s13, 256  ;;  %p2560_p2 = scmp.lt.s32.totalorder %s2906_s13, %s2906_s13 }
  0x2c   : > { %p2553_p9 = scmp.ne.s32.totalorder %s2906_s13, %s2552_s17  ;;  %p2561_p6 = scmp.lt.s32.totalorder %s2552_s17, %s2552_s17 }
  0x2e   : > { %p2555_p10 = pnand %p2553_p9, %p2929_p13  ;;  %p2562_p12 = por %p2561_p6, %p2560_p2 }
  0x30   : > { %p2556_p1 = pneg %p2555_p10 }
  0x32   : > { %p2563_p0 = pnand %p2562_p12, %p2556_p1 }
  0x34   : > { %2566 = shalt.err (!%p2563_p0)
}
  0x35   : > { %s2782_s19 = smov 64   ;;  %s2783_s20 = smov 4  }
  0x36   : > { %2362 = dma.hbm_to_vmem [thread:$0]  (!%p2913_p11), %s3544_s2, 256, %s2906_s13, [#allocation10], %s2782_s19, %s2782_s19, %s2783_s20  }
  0x37   : > { %s3546_s3 = sld [smem:[#allocation24_spill]] }
  0x3d   : > { %s2567_s15 = scalar_lea.hbm %s3546_s3, 256 }
  0x3e   : > { %p2568_p1 = scmp.ne.s32.totalorder %s3546_s3, %s2567_s15  ;;  %p2574_p10 = scmp.lt.u32.totalorder %s2567_s15, %s3546_s3 }
  0x40   : > { %p2570_p2 = pnand %p2568_p1, %p2929_p13 }
  0x42   : > { %p2571_p6 = pneg %p2570_p2 }
  0x44   : > { %p2576_p3 = pnand %p2574_p10, %p2571_p6 }
  0x46   : > { %2579 = shalt.err (!%p2576_p3)
}
  0x47   : > { %s2580_s13 = scalar_lea.vmem %s2917_s16, 256  ;;  %p2588_p12 = scmp.lt.s32.totalorder %s2917_s16, %s2917_s16 }
  0x48   : > { %p2581_p5 = scmp.ne.s32.totalorder %s2917_s16, %s2580_s13  ;;  %p2589_p0 = scmp.lt.s32.totalorder %s2580_s13, %s2580_s13 }
  0x4a   : > { %p2583_p7 = pnand %p2581_p5, %p2929_p13  ;;  %p2590_p1 = por %p2589_p0, %p2588_p12 }
  0x4c   : > { %p2584_p9 = pneg %p2583_p7 }
  0x4e   : > { %p2591_p2 = pnand %p2590_p1, %p2584_p9 }
  0x50   : > { %2594 = shalt.err (!%p2591_p2)
}
  0x51   : > { %2365 = dma.hbm_to_vmem [thread:$0]  (!%p2913_p11), %s3546_s3, 256, %s2917_s16, [#allocation13], %s2782_s19, %s2782_s19, %s2783_s20  }
  0x52   : > { %s3547_s4 = sld [smem:[#allocation25_spill]] }
  0x58   : > { %s2595_s22 = scalar_lea.hbm %s3547_s4, 256 }
  0x59   : > { %p2596_p6 = scmp.ne.s32.totalorder %s3547_s4, %s2595_s22  ;;  %p2602_p5 = scmp.lt.u32.totalorder %s2595_s22, %s3547_s4 }
  0x5b   : > { %p2598_p10 = pnand %p2596_p6, %p2929_p13 }
  0x5d   : > { %p2599_p3 = pneg %p2598_p10 }
  0x5f   : > { %p2604_p7 = pnand %p2602_p5, %p2599_p3 }
  0x61   : > { %2607 = shalt.err (!%p2604_p7)
}
  0x62   : > { %s2608_s13 = scalar_lea.vmem %s315_s18, 256  ;;  %p2616_p1 = scmp.lt.s32.totalorder %s315_s18, %s315_s18 }
  0x63   : > { %p2609_p9 = scmp.ne.s32.totalorder %s315_s18, %s2608_s13  ;;  %p2617_p2 = scmp.lt.s32.totalorder %s2608_s13, %s2608_s13 }
  0x65   : > { %p2611_p12 = pnand %p2609_p9, %p2929_p13  ;;  %p2618_p4 = por %p2617_p2, %p2616_p1 }
  0x67   : > { %p2612_p0 = pneg %p2611_p12 }
  0x69   : > { %p2619_p8 = pnand %p2618_p4, %p2612_p0 }
  0x6b   : > { %2622 = shalt.err (!%p2619_p8)
}
  0x6c   : > { %2368 = dma.hbm_to_vmem [thread:$0]  (!%p2913_p11), %s3547_s4, 256, %s315_s18, [#allocation13], %s2782_s19, %s2782_s19, %s2783_s20  }
  0x6d   : > { %s62_s8 = sadd.s32 1, %s2765_s26  ;;  %s53_s14 = sadd.s32 1, %s2773_s28 }
  0x6e   : > { %p69_p4 = scmp.ne.s32.totalorder %s2765_s26, %s2761_s25  ;;  %p55_p8 = scmp.ge.s32.totalorder %s53_s14, 2 }
  0x6f   : > { %p70_p13 = scmp.eq.s32.totalorder %s2777_s29, 0  ;;  %p3548_p6 = scmp.eq.s32.totalorder %s2883_s30, 1 }
  0x70   : > { %p2383_p3 = scmp.lt.s32.totalorder %s2777_s29, 2  ;;  %s3569_s14 = smov (%p55_p8, %s53_s14), 0 }
  0x71   : > { %p3008_p10 = por %p3548_p6, %p69_p4  ;;  %p71_p5 = por %p70_p13, %p69_p4 }
  0x72   : > { %s339_s10 = sand.u32 1, %s2765_s26   ;;  %s57_s21 = ssub.s32 %s2773_s28, %s3569_s14 }
  0x73   : > { %s3549_s24 = scalar_select %p3008_p10, 1, 0 }
  0x74   : > { %p60_p11 = scmp.eq.s32.totalorder %s57_s21, 0  ;;  %s3018_s18 = sshll.u32 %s339_s10, 2 }
  0x75   : > { %s2119_s19 = sshll.u32 %s2773_s28, 6  ;;  %s343_s15 = scalar_lea.vmem [#allocation6], %s3018_s18 }
  0x76   : > { %s3022_s20 = scalar_select %p60_p11, %s2765_s26, %s62_s8  }
  0x77   : > { %s3027_s12 = scalar_lea.hbm %s3519_s0, %s2119_s19  ;;  %s351_s17 = sshll.u32 %s343_s15, 4  ;;  %s3030_s17 = int_to_ptr.vmem [resolvable:$true] %s351_s17 }
  0x78   : > { %p3034_p7 = pnand %p2383_p3, %p71_p5  ;;  %s3041_s8 = scalar_lea.hbm %s3520_s1, %s2119_s19 }
  0x79   : > { %s358_s21 = sand.u32 1, %s2777_s29   ;;  %s340_s22 = scalar_lea.sflag [#allocation7], %s339_s10 }
  0x7a   : > { %s2623_s23 = scalar_lea.hbm %s3027_s12, 64  ;;  %p2625_p12 = pneg %p3034_p7 }
  0x7b   : > { %p2624_p9 = scmp.ne.s32.totalorder %s3027_s12, %s2623_s23  ;;  %s2628_s3 = scalar_lea.hbm %s3519_s0, 128 }
  0x7c   : > { %p2629_p2 = scmp.lt.u32.totalorder %s3027_s12, %s3519_s0  ;;  %p2630_p4 = scmp.lt.u32.totalorder %s2628_s3, %s2623_s23 }
  0x7d   : > { %p2626_p0 = pnand %p2625_p12, %p2624_p9  ;;  %p2632_p13 = scmp.lt.u32.totalorder %s2623_s23, %s3027_s12 }
  0x7e   : > { %p2631_p8 = por %p2630_p4, %p2629_p2 }
  0x7f   : > { %p2627_p1 = pneg %p2626_p0 }
  0x80   : > { %p2633_p6 = por %p2632_p13, %p2631_p8 }
  0x82   : > { %p2634_p3 = pnand %p2633_p6, %p2627_p1 }
  0x84   : > { %2637 = shalt.err (!%p2634_p3)
}
  0x85   : > { %s2638_s10 = scalar_lea.vmem %s3030_s17, 64  ;;  %s2784_s2 = smov [#allocation6]  }
  0x86   : > { %p2639_p5 = scmp.ne.s32.totalorder %s3030_s17, %s2638_s10  ;;  %s2643_s19 = sshll.u32 %s2784_s2, 4  ;;  %s2644_s19 = int_to_ptr.vmem [resolvable:$false] %s2643_s19 }
  0x87   : > { %s2645_s4 = scalar_lea.vmem %s2644_s19, 128  ;;  %p2646_p0 = scmp.lt.s32.totalorder %s3030_s17, %s2644_s19 }
  0x88   : > { %p2641_p11 = pnand %p2639_p5, %p2625_p12  ;;  %p2647_p2 = scmp.lt.s32.totalorder %s2645_s4, %s2638_s10 }
  0x8a   : > { %p2642_p9 = pneg %p2641_p11  ;;  %p2648_p4 = por %p2647_p2, %p2646_p0 }
  0x8c   : > { %p2649_p8 = pnand %p2648_p4, %p2642_p9 }
  0x8e   : > { %2652 = shalt.err (!%p2649_p8)
}
  0x8f   : > { %2372 = dma.hbm_to_vmem [thread:$0]  (!%p3034_p7), %s3027_s12, 64, %s3030_s17, %s340_s22  }
  0x90   : > { %s362_s3 = scalar_lea.vmem [#allocation9], %s3018_s18  ;;  %s359_s23 = scalar_lea.sflag [#allocation10], %s358_s21 }
  0x91   : > { %s370_s7 = sshll.u32 %s362_s3, 4  ;;  %s2653_s15 = scalar_lea.hbm %s3041_s8, 64  ;;  %s371_s7 = int_to_ptr.vmem [resolvable:$true] %s370_s7 }
  0x92   : > { %p2654_p1 = scmp.ne.s32.totalorder %s3041_s8, %s2653_s15  ;;  %s2658_s2 = scalar_lea.hbm %s3520_s1, 128 }
  0x93   : > { %p2659_p3 = scmp.lt.u32.totalorder %s3041_s8, %s3520_s1  ;;  %p2660_p5 = scmp.lt.u32.totalorder %s2658_s2, %s2653_s15 }
  0x94   : > { %p2656_p13 = pnand %p2654_p1, %p2625_p12  ;;  %p2662_p9 = scmp.lt.u32.totalorder %s2653_s15, %s3041_s8 }
  0x95   : > { %p2661_p11 = por %p2660_p5, %p2659_p3 }
  0x96   : > { %p2657_p6 = pneg %p2656_p13 }
  0x97   : > { %p2663_p0 = por %p2662_p9, %p2661_p11 }
  0x99   : > { %p2664_p2 = pnand %p2663_p0, %p2657_p6 }
  0x9b   : > { %2667 = shalt.err (!%p2664_p2)
}
  0x9c   : > { %s2668_s18 = scalar_lea.vmem %s371_s7, 64  ;;  %s2785_s12 = smov [#allocation9]  }
  0x9d   : > { %p2669_p4 = scmp.ne.s32.totalorder %s371_s7, %s2668_s18  ;;  %s2673_s17 = sshll.u32 %s2785_s12, 4  ;;  %s2674_s17 = int_to_ptr.vmem [resolvable:$false] %s2673_s17 }
  0x9e   : > { %s2675_s21 = scalar_lea.vmem %s2674_s17, 128  ;;  %p2676_p13 = scmp.lt.s32.totalorder %s371_s7, %s2674_s17 }
  0x9f   : > { %p2671_p8 = pnand %p2669_p4, %p2625_p12  ;;  %p2677_p10 = scmp.lt.s32.totalorder %s2675_s21, %s2668_s18 }
  0xa1   : > { %p2672_p1 = pneg %p2671_p8  ;;  %p2678_p3 = por %p2677_p10, %p2676_p13 }
  0xa3   : > { %p2679_p5 = pnand %p2678_p3, %p2672_p1 }
  0xa5   : > { %2682 = shalt.err (!%p2679_p5)
}
  0xa6   : > { %2375 = dma.hbm_to_vmem [thread:$0]  (!%p3034_p7), %s3041_s8, 64, %s371_s7, %s359_s23  }
  0xa7   : > { %p3551_p6 = scmp.ne.s32.totalorder %s3542_s11, 0 }
  0xa8   : > { %s3094_s22 = sand.u32 (!%p3551_p6), 1, %s2761_s25   ;;  %p3552_p12 = scmp.ne.s32.totalorder (!%p3551_p6), %s3539_s9, 0 }
  0xa9   : > { %379 = sbr.rel (%p3551_p6) target bundleno = 1769 (0x6e9), region = 48  ;;  %s2123_s3 = sshll.u32 (!%p3551_p6), %s3094_s22, 2 }
  0xaa   : > { %s382_s15 = scalar_lea.sflag (!%p3551_p6), [#allocation7], %s3094_s22  ;;  %s385_s16 = scalar_lea.vmem (!%p3551_p6), [#allocation6], %s2123_s3 }
  0xb0   : > { %2736 = dma.done.wait (%p3552_p12), %s382_s15, 64  }
  0xb1   : > { %2738 = vsyncadd (%p3552_p12), %s382_s15, 4294967232  ;;  %s390_s13 = sand.u32 1, %s2883_s30   ;;  %s394_s11 = scalar_lea.vmem [#allocation9], %s2123_s3 }
  0xb2   : > { %s391_s8 = scalar_lea.sflag [#allocation10], %s390_s13 }
  0xb3   : > { %2740 = dma.done.wait (%p3552_p12), %s391_s8, 64  }
  0xb4   : > { %2742 = vsyncadd (%p3552_p12), %s391_s8, 4294967232  ;;  %p3553_p10 = scmp.eq.s32.totalorder %s2883_s30, 0 }
  0xb6   : > { %2744 = dma.done.wait (%p3553_p10), [#allocation10], 256   ;;  %p3554_p7 = pmov %p3553_p10 }
  0xb8   : > { %2746 = vsyncadd (%p3554_p7), [#allocation10], 4294967040  ;;  %p3555_p11 = pmov %p3554_p7 }
  0xb9   : > { %p3556_p9 = pmov %p3554_p7 }
  0xba   : > { %2748 = dma.done.wait (%p3555_p11), [#allocation13], 512  }
  0xbb   : > { %2750 = vsyncadd (%p3556_p9), [#allocation13], 4294966784  ;;  %vm474_vm0 = vcmask 261120   ;;  %v2786_v0 = vmov 0.0   ;;  %vm2787_vm1 = vmmov 0   ;;  %v2490_v1 = vld [vmem:[#allocation11] sm:$0xff]  }
  0xbc   : > { %2213 = vmatprep.subr.bf16.mxu0 %v2786_v0  ;;  %2221 = vmatprep.subr.bf16.mxu1 %v2786_v0  ;;  %525 = vst.msk [vmem:[#allocation5] sm:$0xff] %vm474_vm0, %v2786_v0  ;;  %v2491_v2 = vld [vmem:[#allocation12] sm:$0xff]   ;;  %v2492_v3 = vld [vmem:[#allocation11 + $0x8] sm:$0xff]   ;;  %v2493_v4 = vld [vmem:[#allocation12 + $0x8] sm:$0xff]   ;;  %vm646_vm2 = vcmask 31744   ;;  %vm520_vm3 = vcmask 257024  }
  0xbd   : > { %2217 = vmatprep.mubr.msk.bf16.mxu0 %vm2787_vm1, %v2786_v0  ;;  %2225 = vmatprep.mubr.msk.bf16.mxu1 %vm2787_vm1, %v2786_v0  ;;  %v457_v5 = vld [vmem:[%s385_s16] sm:$0xf]  ;;  %v3125_v6 = vld [vmem:[%s394_s11] sm:$0xf]  ;;  %s2788_s30 = smov 124   ;;  %s2789_s9 = smov 120  }
  0xbe   : > { %2214 = vmatpush3.bf16.msra.mxu0 %v2490_v1  ;;  %2222 = vmatpush3.bf16.msra.mxu1 %v2491_v2  ;;  %s2790_s7 = smov 116   ;;  %s2791_s23 = smov 112   ;;  %vm522_vm4 = vcmask 64512   ;;  %v2501_v27 = vld [vmem:[#allocation14] sm:$0xff]   ;;  %v2502_v28 = vld [vmem:[#allocation14 + $0x8] sm:$0xff]   ;;  %v2795_v55 = vmov -inf  }
  0xbf   : > { %2215 = vmatprep.subr.bf16.mxu0 %v2786_v0  ;;  %2223 = vmatprep.subr.bf16.mxu1 %v2786_v0  ;;  %s2792_s10 = smov 108   ;;  %s2793_s2 = smov 104   ;;  %524 = vst.msk [vmem:[#allocation4] sm:$0xff] %vm522_vm4, %v2786_v0  ;;  %523 = vst.msk [vmem:[#allocation3] sm:$0xff] %vm522_vm4, %v2795_v55  ;;  %v2796_v56 = vmov 0   ;;  %vm716_vm5 = vcmask 7168  }
  0xc0   : > { %s2794_s19 = smov 100   ;;  %2466 = vset.pattern.permute.xlu0 %v2796_v56  ;;  %vm729_vm6 = vcmask 1043456   ;;  %vm853_vm7 = vcmask 15368   ;;  %vm996_vm8 = vcmask 23568   ;;  %vm1138_vm9 = vcmask 31768   ;;  %s2804_s4 = smov 4  }
  0xc1   : > { %vm1280_vm10 = vcmask 39968   ;;  %vm1422_vm11 = vcmask 48168   ;;  %vm1564_vm12 = vcmask 56368   ;;  %vm1706_vm13 = vcmask 64568   ;;  %s2805_s18 = smov 8   ;;  %s2806_s12 = smov 12  }
  0xc2   : > { %2216 = vmatpush3.bf16.msra.mxu0 %v2492_v3  ;;  %2224 = vmatpush3.bf16.msra.mxu1 %v2493_v4  ;;  %s2807_s17 = smov 16   ;;  %s2808_s21 = smov 20   ;;  %vm917_vm14 = vcmask 64544   ;;  %vm1059_vm15 = vcmask 97344  }
  0xc3   : > { %2229 = vmatprep.subr.bf16.mxu0 %v2786_v0  ;;  %2237 = vmatprep.subr.bf16.mxu1 %v2786_v0  ;;  %s2809_s3 = smov 24   ;;  %s2810_s15 = smov 28  }
  0xc4   : > { %p3558_p2 = scmp.ne.s32.totalorder %s3549_s24, 0 }
  0xc5   : > { %2218 = vmatmul.mubr.msk.bf16.vlgmr.msra.gmra.mrb[0].mxu0 %vm474_vm0, %v457_v5  ;;  %2226 = vmatmul.mubr.msk.bf16.vlgmr.msra.gmra.mrb[0].mxu1 %vm474_vm0, %v3125_v6 }
  0xc6   : > { %2233 = vmatprep.mubr.msk.bf16.mxu0 %vm2787_vm1, %v2786_v0  ;;  %2239 = vmatprep.mubr.msk.bf16.mxu1 %vm2787_vm1, %v2786_v0 }
  0xc7   : > { %2230 = vmatpush3.bf16.msra.mxu0 %v2501_v27 }
  0xc8   : > { %2231 = vmatprep.subr.bf16.mxu0 %v2786_v0 }
  0xcb   : > { %2232 = vmatpush3.bf16.msra.mxu0 %v2502_v28 }
  0xcc   : > { %2243 = vmatprep.subr.bf16.mxu0 %v2786_v0 }
  0xce   : > { %2234 = vmatmul.mubr.msk.bf16.vlgmr.msra.gmra.mrb[4].mxu0 %vm474_vm0, %v3125_v6 }
  0xcf   : > { %2245 = vmatprep.mubr.msk.bf16.mxu0 %vm2787_vm1, %v2786_v0 }
 0x198   : > { %v512_v7 = vpop.f32.mrb[0].mxu0  ;;  %v581_v10 = vpop.f32.mrb[0].mxu1 }
 0x199   : > { %v518_v8 = vmul.f32 0.5, %v512_v7  ;;  %v2219_v9 = vpop.f32.mrb[1].mxu0  ;;  %v587_v11 = vpack.c.bf16 %v581_v10, %v581_v10  ;;  %v2227_v13 = vpop.f32.mrb[1].mxu1 }
 0x19a   : > { %v515_v12 = vpop.f32.mrb[2].mxu0  ;;  %v584_v16 = vpop.f32.mrb[2].mxu1  ;;  %v2797_v9 = vmov 1  }
 0x19b   : > { %v519_v14 = vpack.c.bf16 %v518_v8, %v518_v8  ;;  %v2220_v15 = vpop.f32.mrb[3].mxu0  ;;  %v2228_v17 = vpop.f32.mrb[3].mxu1  ;;  %783 = vrot.lane.b32.xlu0 %v587_v11, %s2788_s30  ;;  %v651_v18 = vsel %vm646_vm2, %v587_v11, 0  ;;  %926 = vrot.lane.b32.xlu1 %v587_v11, %s2789_s9 }
 0x19c   : > { %2238 = vmatpush3.bf16.xpose.msra.mxu1 %v651_v18  ;;  %2467 = vset.pattern.permute.xlu1 %v2797_v9 }
 0x19d   : > { %521 = vst.msk [vmem:[#allocation2] sm:$0xf] %vm520_vm3, %v519_v14  ;;  %2249 = vmatprep.subr.bf16.mxu1 %v2786_v0  ;;  %vm1343_vm3 = vcmask 162944  }
 0x1a4   : > { %v645_v19 = vld [vmem:[#allocation2] sm:$0xf] }
 0x1a5   : > { %v2494_v20 = vld [vmem:[#allocation2] ss:$0 sps:$4 sm:$0xff]   ;;  %2240 = vmatmul.mubr.msk.bf16.vlgmr.msra.gmra.mrb[4].mxu1 %vm646_vm2, %v645_v19 }
 0x1a6   : > { %v2495_v21 = vld [vmem:[#allocation2] ss:$0 sps:$4 sm:$0xff]   ;;  %924 = vrot.lane.b32.xlu1 %v2494_v20, %s2789_s9  ;;  %2251 = vmatprep.mubr.msk.bf16.mxu1 %vm2787_vm1, %v2786_v0  ;;  %v638_v20 = vpop.f32.mrb[4].mxu0 }
 0x1a7   : > { %780 = vrot.lane.b32.xlu0 %v2495_v21, %s2788_s30  ;;  %v2496_v22 = vld [vmem:[#allocation2] ss:$0 sps:$4 sm:$0xff]   ;;  %v3234_v28 = vpack.c.bf16 %v638_v20, %v638_v20 }
 0x1a8   : > { %v2497_v23 = vld [vmem:[#allocation2] ss:$0 sps:$4 sm:$0xff]  }
 0x1a9   : > { %v2498_v24 = vld [vmem:[#allocation2] ss:$0 sps:$4 sm:$0xff]  }
 0x1aa   : > { %1066 = vrot.lane.b32.xlu1 %v2496_v22, %s2790_s7  ;;  %v2499_v25 = vld [vmem:[#allocation2] ss:$0 sps:$4 sm:$0xff]  }
 0x1ab   : > { %1068 = vrot.lane.b32.xlu0 %v587_v11, %s2790_s7  ;;  %v2500_v26 = vld [vmem:[#allocation2] ss:$0 sps:$4 sm:$0xff]  }
 0x1ae   : > { %1208 = vrot.lane.b32.xlu1 %v2497_v23, %s2791_s23  ;;  %v2235_v23 = vpop.f32.mrb[5].mxu0 }
 0x1af   : > { %1210 = vrot.lane.b32.xlu0 %v587_v11, %s2791_s23 }
 0x1b2   : > { %1350 = vrot.lane.b32.xlu1 %v2498_v24, %s2792_s10 }
 0x1b3   : > { %1352 = vrot.lane.b32.xlu0 %v587_v11, %s2792_s10 }
 0x1b6   : > { %1492 = vrot.lane.b32.xlu1 %v2499_v25, %s2793_s2  ;;  %v641_v25 = vpop.f32.mrb[6].mxu0 }
 0x1b7   : > { %1494 = vrot.lane.b32.xlu0 %v587_v11, %s2793_s2  ;;  %v2236_v27 = vpop.f32.mrb[7].mxu0 }
 0x1ba   : > { %1634 = vrot.lane.b32.xlu1 %v2500_v26, %s2794_s19 }
 0x1bb   : > { %1636 = vrot.lane.b32.xlu0 %v587_v11, %s2794_s19  ;;  %v3219_v11 = vld [vmem:[#allocation3] sm:$0xff] }
 0x20d   : > { %v784_v29 = vpop.permute.xlu0 %783  ;;  %v927_v31 = vpop.permute.xlu1 %926 }
 0x20e   : > { %v789_v30 = vsel %vm646_vm2, %v784_v29, 0  ;;  %v932_v33 = vsel %vm646_vm2, %v927_v31, 0  ;;  %v731_v29 = vsel %vm729_vm6, %v3234_v28, 0 }
 0x20f   : > { %2250 = vmatpush3.bf16.xpose.msra.mxu1 %v789_v30  ;;  %2244 = vmatpush3.bf16.msra.mxu0 %v731_v29 }
 0x210   : > { %2261 = vmatprep.subr.bf16.mxu1 %v2786_v0  ;;  %2255 = vmatprep.subr.bf16.mxu0 %v2786_v0 }
 0x218   : > { %v925_v35 = vpop.permute.xlu1 %924 }
 0x219   : > { %v781_v32 = vpop.permute.xlu0 %780 }
 0x21a   : > { %2252 = vmatmul.mubr.msk.bf16.vlgmr.msra.gmra.mrb[8].mxu1 %vm646_vm2, %v781_v32 }
 0x21b   : > { %2262 = vmatpush3.bf16.xpose.msra.mxu1 %v932_v33  ;;  %2263 = vmatprep.mubr.msk.bf16.mxu1 %vm2787_vm1, %v2786_v0 }
 0x21c   : > { %2273 = vmatprep.subr.bf16.mxu1 %v2786_v0  ;;  %v1067_v38 = vpop.permute.xlu1 %1066 }
 0x21d   : > { %v1069_v34 = vpop.permute.xlu0 %1068 }
 0x21e   : > { %v1074_v36 = vsel %vm646_vm2, %v1069_v34, 0 }
 0x220   : > { %v1209_v41 = vpop.permute.xlu1 %1208 }
 0x221   : > { %v1211_v37 = vpop.permute.xlu0 %1210 }
 0x222   : > { %2264 = vmatmul.mubr.msk.bf16.vlgmr.msra.gmra.mrb[12].mxu1 %vm646_vm2, %v925_v35  ;;  %v1216_v39 = vsel %vm646_vm2, %v1211_v37, 0 }
 0x223   : > { %2274 = vmatpush3.bf16.xpose.msra.mxu1 %v1074_v36  ;;  %2275 = vmatprep.mubr.msk.bf16.mxu1 %vm2787_vm1, %v2786_v0 }
 0x224   : > { %2285 = vmatprep.subr.bf16.mxu1 %v2786_v0  ;;  %v1351_v44 = vpop.permute.xlu1 %1350 }
 0x225   : > { %v1353_v40 = vpop.permute.xlu0 %1352 }
 0x226   : > { %v1358_v42 = vsel %vm646_vm2, %v1353_v40, 0  ;;  %v2798_v40 = vmov 5  }
 0x228   : > { %v1493_v47 = vpop.permute.xlu1 %1492 }
 0x229   : > { %v1495_v43 = vpop.permute.xlu0 %1494 }
 0x22a   : > { %2276 = vmatmul.mubr.msk.bf16.vlgmr.msra.gmra.mrb[16].mxu1 %vm646_vm2, %v1067_v38  ;;  %v1500_v45 = vsel %vm646_vm2, %v1495_v43, 0 }
 0x22b   : > { %2286 = vmatpush3.bf16.xpose.msra.mxu1 %v1216_v39  ;;  %2287 = vmatprep.mubr.msk.bf16.mxu1 %vm2787_vm1, %v2786_v0 }
 0x22c   : > { %2297 = vmatprep.subr.bf16.mxu1 %v2786_v0  ;;  %v1635_v49 = vpop.permute.xlu1 %1634 }
 0x22d   : > { %v1637_v46 = vpop.permute.xlu0 %1636 }
 0x22e   : > { %v1642_v48 = vsel %vm646_vm2, %v1637_v46, 0 }
 0x232   : > { %2288 = vmatmul.mubr.msk.bf16.vlgmr.msra.gmra.mrb[20].mxu1 %vm646_vm2, %v1209_v41 }
 0x233   : > { %2298 = vmatpush3.bf16.xpose.msra.mxu1 %v1358_v42  ;;  %2299 = vmatprep.mubr.msk.bf16.mxu1 %vm2787_vm1, %v2786_v0 }
 0x234   : > { %2309 = vmatprep.subr.bf16.mxu1 %v2786_v0 }
 0x23a   : > { %2300 = vmatmul.mubr.msk.bf16.vlgmr.msra.gmra.mrb[24].mxu1 %vm646_vm2, %v1351_v44 }
 0x23b   : > { %2310 = vmatpush3.bf16.xpose.msra.mxu1 %v1500_v45  ;;  %2311 = vmatprep.mubr.msk.bf16.mxu1 %vm2787_vm1, %v2786_v0  ;;  %v2799_v45 = vmov 2  }
 0x23c   : > { %2321 = vmatprep.subr.bf16.mxu1 %v2786_v0 }
 0x242   : > { %2312 = vmatmul.mubr.msk.bf16.vlgmr.msra.gmra.mrb[28].mxu1 %vm646_vm2, %v1493_v47 }
 0x243   : > { %2322 = vmatpush3.bf16.xpose.msra.mxu1 %v1642_v48  ;;  %2323 = vmatprep.mubr.msk.bf16.mxu1 %vm2787_vm1, %v2786_v0 }
 0x244   : > { %2333 = vmatprep.subr.bf16.mxu1 %v2786_v0 }
 0x24a   : > { %2324 = vmatmul.mubr.msk.bf16.vlgmr.msra.gmra.mrb[32].mxu1 %vm646_vm2, %v1635_v49 }
 0x24b   : > { %2337 = vmatprep.mubr.msk.bf16.mxu1 %vm2787_vm1, %v2786_v0 }
 0x278   : > { %v3198_v50 = vpop.f32.mrb[4].mxu1 }
 0x279   : > { %v2241_v51 = vpop.f32.mrb[5].mxu1  ;;  %v695_v52 = vsel %vm522_vm4, %v3198_v50, -inf }
 0x27a   : > { %696 = vmax.xlane.f32.xlu0 %v695_v52  ;;  %v690_v53 = vpop.f32.mrb[6].mxu1  ;;  %v2800_v51 = vmov 3  }
 0x27b   : > { %v2242_v54 = vpop.f32.mrb[7].mxu1 }
 0x2ed   : > { %v3204_v57 = vpop.f32.mrb[8].mxu1 }
 0x2ee   : > { %v2253_v58 = vpop.f32.mrb[9].mxu1  ;;  %v832_v59 = vsel %vm522_vm4, %v3204_v57, -inf }
 0x2ef   : > { %833 = vmax.xlane.f32.xlu1 %v832_v59  ;;  %v828_v60 = vpop.f32.mrb[10].mxu1  ;;  %v2801_v58 = vmov 4  }
 0x2f0   : > { %v2254_v61 = vpop.f32.mrb[11].mxu1 }
 0x2f5   : > { %v3208_v62 = vpop.f32.mrb[12].mxu1 }
 0x2f6   : > { %v2265_v63 = vpop.f32.mrb[13].mxu1  ;;  %v975_v1 = vsel %vm522_vm4, %v3208_v62, -inf }
 0x2f7   : > { %976 = vmax.xlane.f32.xlu0 %v975_v1  ;;  %v971_v2 = vpop.f32.mrb[14].mxu1 }
 0x2f8   : > { %v2266_v3 = vpop.f32.mrb[15].mxu1  ;;  %v2802_v2 = vmov 6  }
 0x2fd   : > { %v3212_v4 = vpop.f32.mrb[16].mxu1 }
 0x2fe   : > { %v2277_v5 = vpop.f32.mrb[17].mxu1  ;;  %v1117_v6 = vsel %vm522_vm4, %v3212_v4, -inf }
 0x2ff   : > { %1118 = vmax.xlane.f32.xlu0 %v1117_v6  ;;  %v1113_v7 = vpop.f32.mrb[18].mxu1 }
 0x300   : > { %v2278_v8 = vpop.f32.mrb[19].mxu1 }
 0x305   : > { %v3217_v10 = vpop.f32.mrb[20].mxu1 }
 0x306   : > { %v2289_v12 = vpop.f32.mrb[21].mxu1  ;;  %v1259_v13 = vsel %vm522_vm4, %v3217_v10, -inf }
 0x307   : > { %v697_v14 = vpop.xlane.xlu0 %696  ;;  %1260 = vmax.xlane.f32.xlu1 %v1259_v13  ;;  %v1255_v15 = vpop.f32.mrb[22].mxu1 }
 0x308   : > { %v3224_v16 = vmax.f32 %v3219_v11, %v697_v14  ;;  %v2290_v17 = vpop.f32.mrb[23].mxu1 }
 0x30a   : > { %v699_v18 = vsub.f32 %v3219_v11, %v3224_v16  ;;  %775 = vst.msk [vmem:[#allocation3] sm:$0xff] %vm716_vm5, %v3224_v16 }
 0x30d   : > { %v3230_v19 = vpop.f32.mrb[24].mxu1 }
 0x30e   : > { %v2301_v21 = vpop.f32.mrb[25].mxu1  ;;  %v1401_v22 = vsel %vm522_vm4, %v3230_v19, -inf }
 0x30f   : > { %1402 = vmax.xlane.f32.xlu0 %v1401_v22  ;;  %v1397_v24 = vpop.f32.mrb[26].mxu1  ;;  %v2803_v21 = vmov 7  }
 0x310   : > { %v2302_v26 = vpop.f32.mrb[27].mxu1 }
 0x311   : > { %v3249_v41 = vld [vmem:[#allocation3] sm:$0xff] }
 0x315   : > { %v3238_v30 = vpop.f32.mrb[28].mxu1 }
 0x316   : > { %v2313_v31 = vpop.f32.mrb[29].mxu1  ;;  %v1543_v32 = vsel %vm522_vm4, %v3238_v30, -inf }
 0x317   : > { %1544 = vmax.xlane.f32.xlu1 %v1543_v32  ;;  %v1539_v33 = vpop.f32.mrb[30].mxu1 }
 0x318   : > { %v2314_v34 = vpop.f32.mrb[31].mxu1 }
 0x31d   : > { %v3243_v35 = vpop.f32.mrb[32].mxu1 }
 0x31e   : > { %v2325_v36 = vpop.f32.mrb[33].mxu1  ;;  %v1685_v37 = vsel %vm522_vm4, %v3243_v35, -inf }
 0x31f   : > { %1686 = vmax.xlane.f32.xlu1 %v1685_v37  ;;  %v1681_v38 = vpop.f32.mrb[34].mxu1 }
 0x320   : > { %v2326_v39 = vpop.f32.mrb[35].mxu1 }
 0x325   : > { %704 = vperm.xlu0 %2466, %v3224_v16  }
 0x329   : > { %2471 = vset.pattern.permute.xlu0 %v2798_v40 }
 0x37c   : > { %v834_v42 = vpop.xlane.xlu1 %833 }
 0x37d   : > { %v3252_v43 = vmax.f32 %v3249_v41, %v834_v42 }
 0x37f   : > { %v836_v44 = vsub.f32 %v3249_v41, %v3252_v43  ;;  %919 = vst.msk [vmem:[#allocation3] sm:$0xff] %vm853_vm7, %v3252_v43  ;;  %841 = vperm.xlu1 %2467, %v3252_v43  }
 0x383   : > { %2468 = vset.pattern.permute.xlu1 %v2799_v45 }
 0x384   : > { %v977_v47 = vpop.xlane.xlu0 %976 }
 0x386   : > { %v3260_v46 = vld [vmem:[#allocation3] sm:$0xff] }
 0x387   : > { %v3263_v48 = vmax.f32 %v3260_v46, %v977_v47 }
 0x389   : > { %v979_v49 = vsub.f32 %v3260_v46, %v3263_v48  ;;  %1061 = vst.msk [vmem:[#allocation3] sm:$0xff] %vm996_vm8, %v3263_v48  ;;  %984 = vperm.xlu1 %2468, %v3263_v48   ;;  %v718_v46 = vld [vmem:[#allocation5] sm:$0xff] }
 0x38c   : > { %v1119_v53 = vpop.xlane.xlu0 %1118 }
 0x38d   : > { %864 = vrot.lane.b32.xlu1 %v3234_v28, %s2788_s30  ;;  %s2128_s30 = sshll.u32 %s3094_s22, 3 }
 0x38e   : > { %2469 = vset.pattern.permute.xlu1 %v2800_v51 }
 0x390   : > { %v3273_v52 = vld [vmem:[#allocation3] sm:$0xff] }
 0x391   : > { %v3276_v54 = vmax.f32 %v3273_v52, %v1119_v53 }
 0x393   : > { %v1121_v55 = vsub.f32 %v3273_v52, %v3276_v54  ;;  %1203 = vst.msk [vmem:[#allocation3] sm:$0xff] %vm1138_vm9, %v3276_v54  ;;  %1126 = vperm.xlu1 %2469, %v3276_v54  }
 0x394   : > { %v1261_v60 = vpop.xlane.xlu1 %1260 }
 0x397   : > { %1006 = vrot.lane.b32.xlu1 %v3234_v28, %s2789_s9 }
 0x398   : > { %2470 = vset.pattern.permute.xlu1 %v2801_v58 }
 0x39a   : > { %v3286_v59 = vld [vmem:[#allocation3] sm:$0xff] }
 0x39b   : > { %v3289_v61 = vmax.f32 %v3286_v59, %v1261_v60 }
 0x39c   : > { %v1403_v1 = vpop.xlane.xlu0 %1402 }
 0x39d   : > { %v1263_v63 = vsub.f32 %v3286_v59, %v3289_v61  ;;  %1345 = vst.msk [vmem:[#allocation3] sm:$0xff] %vm1280_vm10, %v3289_v61  ;;  %1268 = vperm.xlu1 %2470, %v3289_v61  }
 0x3a1   : > { %1148 = vrot.lane.b32.xlu1 %v3234_v28, %s2790_s7 }
 0x3a2   : > { %2472 = vset.pattern.permute.xlu1 %v2802_v2 }
 0x3a4   : > { %v3299_v3 = vld [vmem:[#allocation3] sm:$0xff]  ;;  %v705_v5 = vpop.permute.xlu0 %704 }
 0x3a5   : > { %v3302_v6 = vmax.f32 %v3299_v3, %v1403_v1  ;;  %v707_v7 = vsub.f32 %v3198_v50, %v705_v5  ;;  %1290 = vrot.lane.b32.xlu1 %v3234_v28, %s2791_s23  ;;  %v1545_v50 = vpop.xlane.xlu1 %1544  ;;  %s2166_s23 = sshll.u32 %s2769_s27, 7  ;;  %s1937_s27 = scalar_lea.sflag [#allocation8], %s3094_s22 }
 0x3a7   : > { %v1405_v8 = vsub.f32 %v3299_v3, %v3302_v6  ;;  %1487 = vst.msk [vmem:[#allocation3] sm:$0xff] %vm1422_vm11, %v3302_v6  ;;  %v708_v12 = vmul.f32 1.442695, %v707_v7  ;;  %1410 = vperm.xlu0 %2471, %v3302_v6  }
 0x3a9   : > { %2505 = vpow2.f32 %v708_v12 }
 0x3ab   : > { %1432 = vrot.lane.b32.xlu0 %v3234_v28, %s2792_s10  ;;  %s446_s10 = scalar_lea.vmem [#allocation15], %s2128_s30 }
 0x3ac   : > { %2474 = vset.pattern.permute.xlu0 %v2796_v56  ;;  %v1687_v23 = vpop.xlane.xlu1 %1686 }
 0x3ae   : > { %v3315_v13 = vld [vmem:[#allocation3] sm:$0xff] }
 0x3af   : > { %v3318_v14 = vmax.f32 %v3315_v13, %v1545_v50  ;;  %1574 = vrot.lane.b32.xlu0 %v3234_v28, %s2793_s2  ;;  %v700_v50 = vmul.f32 1.442695, %v699_v18  ;;  %s1951_s2 = sshll.u32 %s446_s10, 4  ;;  %s3471_s2 = int_to_ptr.vmem [resolvable:$true] %s1951_s2 }
 0x3b1   : > { %v1547_v15 = vsub.f32 %v3315_v13, %v3318_v14  ;;  %1629 = vst.msk [vmem:[#allocation3] sm:$0xff] %vm1564_vm12, %v3318_v14  ;;  %1552 = vperm.xlu1 %2472, %v3318_v14  }
 0x3b3   : > { %v2506_v17 = vpop.eup %2505 }
 0x3b4   : > { %v725_v20 = vpack.c.bf16 %v2506_v17, %v2506_v17  ;;  %v712_v26 = vsel %vm522_vm4, %v2506_v17, 0.0 }
 0x3b5   : > { %2473 = vset.pattern.permute.xlu1 %v2803_v21 }
 0x3b6   : > { %2246 = vmatmul.mubr.msk.bf16.vlgmr.msra.gmra.mrb[8].mxu0 %vm522_vm4, %v725_v20 }
 0x3b7   : > { %2257 = vmatprep.mubr.msk.bf16.mxu0 %vm2787_vm1, %v2786_v0 }
 0x3b8   : > { %v3331_v22 = vld [vmem:[#allocation3] sm:$0xff] }
 0x3b9   : > { %v3334_v24 = vmax.f32 %v3331_v22, %v1687_v23 }
 0x3bb   : > { %v1689_v25 = vsub.f32 %v3331_v22, %v3334_v24  ;;  %1771 = vst.msk [vmem:[#allocation3] sm:$0xff] %vm1706_vm13, %v3334_v24  ;;  %1694 = vperm.xlu1 %2473, %v3334_v24  }
 0x3bf   : > { %1716 = vrot.lane.b32.xlu1 %v3234_v28, %s2794_s19 }
 0x3c0   : > { %2475 = vset.pattern.permute.xlu1 %v2797_v9 }
 0x3ce   : > { %713 = vadd.xlane.f32.xlu0 %v712_v26 }
 0x3fe   : > { %v842_v27 = vpop.permute.xlu1 %841 }
 0x3ff   : > { %v844_v29 = vsub.f32 %v3204_v57, %v842_v27 }
 0x401   : > { %v845_v31 = vmul.f32 1.442695, %v844_v29 }
 0x403   : > { %2507 = vpow2.f32 %v845_v31 }
 0x408   : > { %v985_v32 = vpop.permute.xlu1 %984 }
 0x409   : > { %v987_v33 = vsub.f32 %v3208_v62, %v985_v32 }
 0x40b   : > { %v988_v34 = vmul.f32 1.442695, %v987_v33 }
 0x40c   : > { %v865_v36 = vpop.permute.xlu1 %864 }
 0x40d   : > { %v2508_v37 = vpop.eup %2507  ;;  %2509 = vpow2.f32 %v988_v34  ;;  %v870_v38 = vsel %vm729_vm6, %v865_v36, 0 }
 0x40e   : > { %2256 = vmatpush3.bf16.msra.mxu0 %v870_v38  ;;  %v849_v28 = vsel %vm522_vm4, %v2508_v37, 0.0  ;;  %v862_v39 = vpack.c.bf16 %v2508_v37, %v2508_v37 }
 0x40f   : > { %850 = vadd.xlane.f32.xlu1 %v849_v28  ;;  %2267 = vmatprep.subr.bf16.mxu0 %v2786_v0 }
 0x411   : > { %2258 = vmatmul.mubr.msk.bf16.vlgmr.msra.gmra.mrb[12].mxu0 %vm522_vm4, %v862_v39 }
 0x412   : > { %v1127_v57 = vpop.permute.xlu1 %1126  ;;  %2269 = vmatprep.mubr.msk.bf16.mxu0 %vm2787_vm1, %v2786_v0 }
 0x413   : > { %v1129_v62 = vsub.f32 %v3212_v4, %v1127_v57 }
 0x415   : > { %v1130_v42 = vmul.f32 1.442695, %v1129_v62 }
 0x416   : > { %v1007_v47 = vpop.permute.xlu1 %1006 }
 0x417   : > { %v2510_v53 = vpop.eup %2509  ;;  %2511 = vpow2.f32 %v1130_v42  ;;  %v1012_v60 = vsel %vm729_vm6, %v1007_v47, 0 }
 0x418   : > { %2268 = vmatpush3.bf16.msra.mxu0 %v1012_v60  ;;  %v992_v1 = vsel %vm522_vm4, %v2510_v53, 0.0  ;;  %v1005_v5 = vpack.c.bf16 %v2510_v53, %v2510_v53 }
 0x419   : > { %993 = vadd.xlane.f32.xlu0 %v992_v1  ;;  %2279 = vmatprep.subr.bf16.mxu0 %v2786_v0 }
 0x41b   : > { %2270 = vmatmul.mubr.msk.bf16.vlgmr.msra.gmra.mrb[16].mxu0 %vm522_vm4, %v1005_v5 }
 0x41c   : > { %v1269_v7 = vpop.permute.xlu1 %1268  ;;  %2281 = vmatprep.mubr.msk.bf16.mxu0 %vm2787_vm1, %v2786_v0 }
 0x41d   : > { %v1271_v4 = vsub.f32 %v3217_v10, %v1269_v7 }
 0x41f   : > { %v1272_v12 = vmul.f32 1.442695, %v1271_v4 }
 0x420   : > { %v1149_v17 = vpop.permute.xlu1 %1148 }
 0x421   : > { %v2512_v20 = vpop.eup %2511  ;;  %2513 = vpow2.f32 %v1272_v12  ;;  %v1154_v23 = vsel %vm729_vm6, %v1149_v17, 0 }
 0x422   : > { %2280 = vmatpush3.bf16.msra.mxu0 %v1154_v23  ;;  %v1134_v26 = vsel %vm522_vm4, %v2512_v20, 0.0  ;;  %v1147_v27 = vpack.c.bf16 %v2512_v20, %v2512_v20  ;;  %2515 = vpow2.f32 %v700_v50  ;;  %v837_v50 = vmul.f32 1.442695, %v836_v44  ;;  %v710_v23 = vld [vmem:[#allocation4] sm:$0xff] }
 0x423   : > { %1135 = vadd.xlane.f32.xlu1 %v1134_v26  ;;  %2291 = vmatprep.subr.bf16.mxu0 %v2786_v0 }
 0x424   : > { %v1291_v29 = vpop.permute.xlu1 %1290 }
 0x425   : > { %v1296_v10 = vsel %vm729_vm6, %v1291_v29, 0  ;;  %2282 = vmatmul.mubr.msk.bf16.vlgmr.msra.gmra.mrb[20].mxu0 %vm522_vm4, %v1147_v27 }
 0x426   : > { %v1411_v11 = vpop.permute.xlu0 %1410  ;;  %2292 = vmatpush3.bf16.msra.mxu0 %v1296_v10  ;;  %2293 = vmatprep.mubr.msk.bf16.mxu0 %vm2787_vm1, %v2786_v0 }
 0x427   : > { %v1413_v16 = vsub.f32 %v3230_v19, %v1411_v11  ;;  %2303 = vmatprep.subr.bf16.mxu0 %v2786_v0 }
 0x429   : > { %v1414_v18 = vmul.f32 1.442695, %v1413_v16  ;;  %v980_v16 = vmul.f32 1.442695, %v979_v49 }
 0x42a   : > { %v1433_v32 = vpop.permute.xlu0 %1432 }
 0x42b   : > { %v2514_v31 = vpop.eup %2513  ;;  %2517 = vpow2.f32 %v1414_v18  ;;  %v1438_v37 = vsel %vm729_vm6, %v1433_v32, 0 }
 0x42c   : > { %v1276_v33 = vsel %vm522_vm4, %v2514_v31, 0.0  ;;  %v1289_v34 = vpack.c.bf16 %v2514_v31, %v2514_v31  ;;  %v2516_v36 = vpop.eup %2515 }
 0x42d   : > { %1277 = vadd.xlane.f32.xlu1 %v1276_v33  ;;  %v711_v26 = vmul.f32 %v2516_v36, %v710_v23 }
 0x42e   : > { %2294 = vmatmul.mubr.msk.bf16.vlgmr.msra.gmra.mrb[24].mxu0 %vm522_vm4, %v1289_v34  ;;  %v1575_v57 = vpop.permute.xlu0 %1574  ;;  %v1122_v34 = vmul.f32 1.442695, %v1121_v55 }
 0x42f   : > { %2304 = vmatpush3.bf16.msra.mxu0 %v1438_v37  ;;  %721 = vperm.xlu0 %2474, %v2516_v36   ;;  %v1580_v47 = vsel %vm729_vm6, %v1575_v57, 0 }
 0x430   : > { %v1553_v38 = vpop.permute.xlu1 %1552  ;;  %2305 = vmatprep.mubr.msk.bf16.mxu0 %vm2787_vm1, %v2786_v0  ;;  %2315 = vmatprep.subr.bf16.mxu0 %v2786_v0 }
 0x431   : > { %v1555_v19 = vsub.f32 %v3238_v30, %v1553_v38 }
 0x433   : > { %v1556_v28 = vmul.f32 1.442695, %v1555_v19  ;;  %2476 = vset.pattern.permute.xlu0 %v2799_v45 }
 0x435   : > { %v2518_v39 = vpop.eup %2517  ;;  %2519 = vpow2.f32 %v1556_v28 }
 0x436   : > { %v1418_v62 = vsel %vm522_vm4, %v2518_v39, 0.0  ;;  %v1431_v42 = vpack.c.bf16 %v2518_v39, %v2518_v39  ;;  %v1264_v39 = vmul.f32 1.442695, %v1263_v63  ;;  %v1548_v63 = vmul.f32 1.442695, %v1547_v15 }
 0x437   : > { %1419 = vadd.xlane.f32.xlu1 %v1418_v62 }
 0x438   : > { %2306 = vmatmul.mubr.msk.bf16.vlgmr.msra.gmra.mrb[28].mxu0 %vm522_vm4, %v1431_v42 }
 0x439   : > { %2316 = vmatpush3.bf16.msra.mxu0 %v1580_v47  ;;  %2317 = vmatprep.mubr.msk.bf16.mxu0 %vm2787_vm1, %v2786_v0  ;;  %v1406_v47 = vmul.f32 1.442695, %v1405_v8 }
 0x43a   : > { %v1695_v53 = vpop.permute.xlu1 %1694  ;;  %2327 = vmatprep.subr.bf16.mxu0 %v2786_v0 }
 0x43b   : > { %v1697_v30 = vsub.f32 %v3243_v35, %v1695_v53 }
 0x43d   : > { %v1698_v60 = vmul.f32 1.442695, %v1697_v30 }
 0x43e   : > { %v1717_v5 = vpop.permute.xlu1 %1716 }
 0x43f   : > { %v2520_v1 = vpop.eup %2519  ;;  %2521 = vpow2.f32 %v1698_v60  ;;  %v1722_v12 = vsel %vm729_vm6, %v1717_v5, 0  ;;  %vm1769_vm6 = vcmask 261344  }
 0x440   : > { %v1560_v7 = vsel %vm522_vm4, %v2520_v1, 0.0  ;;  %v1573_v4 = vpack.c.bf16 %v2520_v1, %v2520_v1  ;;  %2523 = vpow2.f32 %v837_v50 }
 0x441   : > { %1561 = vadd.xlane.f32.xlu1 %v1560_v7  ;;  %2525 = vpow2.f32 %v980_v16 }
 0x442   : > { %2318 = vmatmul.mubr.msk.bf16.vlgmr.msra.gmra.mrb[32].mxu0 %vm522_vm4, %v1573_v4  ;;  %2527 = vpow2.f32 %v1122_v34 }
 0x443   : > { %2328 = vmatpush3.bf16.msra.mxu0 %v1722_v12  ;;  %2329 = vmatprep.mubr.msk.bf16.mxu0 %vm2787_vm1, %v2786_v0  ;;  %2529 = vpow2.f32 %v1264_v39  ;;  %vm1201_vm1 = vcmask 130144  }
 0x444   : > { %2531 = vpow2.f32 %v1406_v47 }
 0x445   : > { %2533 = vpow2.f32 %v1548_v63  ;;  %v2504_v63 = vld [vmem:[%s3524_s5 + $0x8] sm:$0xff]  }
 0x449   : > { %v2522_v35 = vpop.eup %2521 }
 0x44a   : > { %v1715_v17 = vpack.c.bf16 %v2522_v35, %v2522_v35  ;;  %v2524_v20 = vpop.eup %2523  ;;  %v1702_v41 = vsel %vm522_vm4, %v2522_v35, 0.0 }
 0x44b   : > { %v2526_v36 = vpop.eup %2525 }
 0x44c   : > { %2330 = vmatmul.mubr.msk.bf16.vlgmr.msra.gmra.mrb[36].mxu0 %vm522_vm4, %v1715_v17  ;;  %v2528_v62 = vpop.eup %2527  ;;  %vm1485_vm4 = vcmask 195744  }
 0x44d   : > { %v2530_v53 = vpop.eup %2529 }
 0x44e   : > { %v2532_v1 = vpop.eup %2531 }
 0x44f   : > { %v2534_v3 = vpop.eup %2533 }
 0x452   : > { %858 = vperm.xlu1 %2475, %v2524_v20  }
 0x456   : > { %2480 = vset.pattern.permute.xlu1 %v2802_v2 }
 0x45b   : > { %v714_v27 = vpop.xlane.xlu0 %713 }
 0x45c   : > { %v715_v29 = vadd.f32 %v714_v27, %v711_v26 }
 0x45e   : > { %717 = vst.msk [vmem:[#allocation4] sm:$0xff] %vm716_vm5, %v715_v29  ;;  %v1690_v29 = vmul.f32 1.442695, %v1689_v25  ;;  %vm1627_vm5 = vcmask 228544  }
 0x460   : > { %2535 = vpow2.f32 %v1690_v29 }
 0x465   : > { %v847_v18 = vld [vmem:[#allocation4] sm:$0xff] }
 0x466   : > { %v848_v31 = vmul.f32 %v2524_v20, %v847_v18 }
 0x46a   : > { %v2536_v18 = vpop.eup %2535 }
 0x476   : > { %1703 = vadd.xlane.f32.xlu1 %v1702_v41 }
 0x489   : > { %v767_v43 = vpop.f32.mrb[8].mxu0 }
 0x48a   : > { %v2247_v44 = vpop.f32.mrb[9].mxu0 }
 0x48b   : > { %v770_v10 = vpop.f32.mrb[10].mxu0 }
 0x48c   : > { %v2248_v11 = vpop.f32.mrb[11].mxu0 }
 0x49c   : > { %v851_v32 = vpop.xlane.xlu1 %850 }
 0x49d   : > { %v852_v33 = vadd.f32 %v851_v32, %v848_v31 }
 0x49f   : > { %854 = vst.msk [vmem:[#allocation4] sm:$0xff] %vm853_vm7, %v852_v33 }
 0x4a6   : > { %v990_v37 = vld [vmem:[#allocation4] sm:$0xff]  ;;  %v994_v19 = vpop.xlane.xlu0 %993 }
 0x4a7   : > { %v991_v38 = vmul.f32 %v2526_v36, %v990_v37 }
 0x4a9   : > { %v995_v28 = vadd.f32 %v994_v19, %v991_v38 }
 0x4ab   : > { %997 = vst.msk [vmem:[#allocation4] sm:$0xff] %vm996_vm8, %v995_v28 }
 0x4ae   : > { %v722_v48 = vpop.permute.xlu0 %721 }
 0x4af   : > { %v724_v49 = vmul.f32 %v722_v48, %v718_v46 }
 0x4b0   : > { %v1136_v54 = vpop.xlane.xlu1 %1135 }
 0x4b1   : > { %v773_v57 = vadd.f32 %v767_v43, %v724_v49 }
 0x4b2   : > { %v1132_v42 = vld [vmem:[#allocation4] sm:$0xff] }
 0x4b3   : > { %774 = vst.msk [vmem:[#allocation5] sm:$0xff] %vm646_vm2, %v773_v57  ;;  %v1133_v52 = vmul.f32 %v2528_v62, %v1132_v42 }
 0x4b5   : > { %v1137_v55 = vadd.f32 %v1136_v54, %v1133_v52 }
 0x4b7   : > { %1139 = vst.msk [vmem:[#allocation4] sm:$0xff] %vm1138_vm9, %v1137_v55 }
 0x4ba   : > { %v1278_v59 = vpop.xlane.xlu1 %1277 }
 0x4be   : > { %v1274_v30 = vld [vmem:[#allocation4] sm:$0xff] }
 0x4bf   : > { %v1275_v60 = vmul.f32 %v2530_v53, %v1274_v30 }
 0x4c1   : > { %v1279_v61 = vadd.f32 %v1278_v59, %v1275_v60 }
 0x4c3   : > { %1281 = vst.msk [vmem:[#allocation4] sm:$0xff] %vm1280_vm10, %v1279_v61  ;;  %v2503_v61 = vld [vmem:[%s3524_s5] sm:$0xff]  }
 0x4c4   : > { %v1420_v4 = vpop.xlane.xlu1 %1419  ;;  %2334 = vmatpush3.bf16.msra.mxu1 %v2503_v61 }
 0x4c5   : > { %2335 = vmatprep.subr.bf16.mxu1 %v2786_v0 }
 0x4c8   : > { %2336 = vmatpush3.bf16.msra.mxu1 %v2504_v63 }
 0x4ca   : > { %v1416_v5 = vld [vmem:[#allocation4] sm:$0xff] }
 0x4cb   : > { %v1417_v7 = vmul.f32 %v2532_v1, %v1416_v5 }
 0x4cd   : > { %v1421_v12 = vadd.f32 %v1420_v4, %v1417_v7 }
 0x4ce   : > { %v1562_v50 = vpop.xlane.xlu1 %1561 }
 0x4cf   : > { %1423 = vst.msk [vmem:[#allocation4] sm:$0xff] %vm1422_vm11, %v1421_v12 }
 0x4d2   : > { %v859_v11 = vpop.permute.xlu1 %858 }
 0x4d6   : > { %v1558_v6 = vld [vmem:[#allocation4] sm:$0xff] }
 0x4d7   : > { %v1559_v8 = vmul.f32 %v2534_v3, %v1558_v6 }
 0x4d9   : > { %v1563_v35 = vadd.f32 %v1562_v50, %v1559_v8 }
 0x4db   : > { %1565 = vst.msk [vmem:[#allocation4] sm:$0xff] %vm1564_vm12, %v1563_v35 }
 0x4e2   : > { %v1700_v16 = vld [vmem:[#allocation4] sm:$0xff] }
 0x4e3   : > { %v1701_v24 = vmul.f32 %v2536_v18, %v1700_v16 }
 0x4e4   : > { %v906_v17 = vpop.f32.mrb[12].mxu0 }
 0x4e5   : > { %913 = vrot.lane.b32.xlu0 %v906_v17, %s2804_s4  ;;  %v2259_v13 = vpop.f32.mrb[13].mxu0 }
 0x4e6   : > { %v909_v14 = vpop.f32.mrb[14].mxu0 }
 0x4e7   : > { %v2260_v15 = vpop.f32.mrb[15].mxu0 }
 0x4e9   : > { %1001 = vperm.xlu0 %2476, %v2526_v36  }
 0x4ed   : > { %2477 = vset.pattern.permute.xlu0 %v2800_v51 }
 0x4ee   : > { %v1048_v20 = vpop.f32.mrb[16].mxu0 }
 0x4ef   : > { %1055 = vrot.lane.b32.xlu0 %v1048_v20, %s2805_s18  ;;  %v2271_v23 = vpop.f32.mrb[17].mxu0  ;;  %s3557_s18 = sld [smem:[#allocation26_spill]] }
 0x4f0   : > { %v1051_v26 = vpop.f32.mrb[18].mxu0 }
 0x4f1   : > { %v2272_v27 = vpop.f32.mrb[19].mxu0 }
 0x4f3   : > { %1143 = vperm.xlu0 %2477, %v2528_v62  }
 0x4f7   : > { %2478 = vset.pattern.permute.xlu0 %v2801_v58 }
 0x4f8   : > { %v1190_v41 = vpop.f32.mrb[20].mxu0 }
 0x4f9   : > { %1197 = vrot.lane.b32.xlu0 %v1190_v41, %s2806_s12  ;;  %v2283_v43 = vpop.f32.mrb[21].mxu0  ;;  %s3469_s12 = scalar_lea.hbm %s3557_s18, %s2166_s23 }
 0x4fa   : > { %v1193_v44 = vpop.f32.mrb[22].mxu0 }
 0x4fb   : > { %v2284_v10 = vpop.f32.mrb[23].mxu0 }
 0x4fd   : > { %1285 = vperm.xlu0 %2478, %v2530_v53  }
 0x501   : > { %2479 = vset.pattern.permute.xlu0 %v2798_v40  ;;  %v1332_v31 = vpop.f32.mrb[24].mxu0 }
 0x502   : > { %1427 = vperm.xlu0 %2479, %v2532_v1   ;;  %1339 = vrot.lane.b32.xlu1 %v1332_v31, %s2807_s17  ;;  %v2295_v22 = vpop.f32.mrb[25].mxu0  ;;  %s2683_s17 = scalar_lea.vmem %s3471_s2, 128 }
 0x503   : > { %v1704_v25 = vpop.xlane.xlu1 %1703  ;;  %v1335_v32 = vpop.f32.mrb[26].mxu0  ;;  %p2684_p0 = scmp.ne.s32.totalorder %s3471_s2, %s2683_s17 }
 0x504   : > { %v1705_v33 = vadd.f32 %v1704_v25, %v1701_v24  ;;  %v2296_v34 = vpop.f32.mrb[27].mxu0 }
 0x505   : > { %p2685_p4 = pnand %p2684_p0, %p3558_p2 }
 0x506   : > { %1707 = vst.msk [vmem:[#allocation4] sm:$0xff] %vm1706_vm13, %v1705_v33  ;;  %1569 = vperm.xlu1 %2480, %v2534_v3   ;;  %2483 = vset.pattern.permute.xlu0 %v2797_v9 }
 0x507   : > { %p2686_p8 = pneg %p2685_p4 }
 0x50a   : > { %2481 = vset.pattern.permute.xlu1 %v2803_v21 }
 0x50b   : > { %1711 = vperm.xlu1 %2481, %v2536_v18   ;;  %v1474_v36 = vpop.f32.mrb[28].mxu0 }
 0x50c   : > { %1481 = vrot.lane.b32.xlu0 %v1474_v36, %s2808_s21  ;;  %v2307_v37 = vpop.f32.mrb[29].mxu0  ;;  %s2811_s21 = smov [#allocation15]  }
 0x50d   : > { %v1477_v38 = vpop.f32.mrb[30].mxu0  ;;  %v1775_v19 = vld [vmem:[#allocation4] sm:$0xff] }
 0x50e   : > { %v2308_v28 = vpop.f32.mrb[31].mxu0  ;;  %2537 = vrcp.f32 %v1775_v19 }
 0x50f   : > { %2482 = vset.pattern.permute.xlu1 %v2796_v56  ;;  %v855_v56 = vld [vmem:[#allocation5] sm:$0xff] }
 0x515   : > { %v1616_v46 = vpop.f32.mrb[32].mxu0 }
 0x516   : > { %1623 = vrot.lane.b32.xlu0 %v1616_v46, %s2809_s3  ;;  %v2319_v48 = vpop.f32.mrb[33].mxu0  ;;  %s2687_s3 = sshll.u32 %s2811_s21, 4  ;;  %s2688_s3 = int_to_ptr.vmem [resolvable:$false] %s2687_s3 }
 0x517   : > { %v1619_v49 = vpop.f32.mrb[34].mxu0  ;;  %p2690_p1 = scmp.lt.s32.totalorder %s3471_s2, %s2688_s3 }
 0x518   : > { %v2538_v39 = vpop.eup %2537  ;;  %v2320_v9 = vpop.f32.mrb[35].mxu0 }
 0x519   : > { %1780 = vperm.xlu1 %2482, %v2538_v39  }
 0x51d   : > { %2484 = vset.pattern.permute.xlu1 %v2799_v45  ;;  %v861_v45 = vmul.f32 %v859_v11, %v855_v56 }
 0x51e   : > { %1800 = vperm.xlu1 %2484, %v2538_v39  }
 0x51f   : > { %v1758_v57 = vpop.f32.mrb[36].mxu0 }
 0x520   : > { %1765 = vrot.lane.b32.xlu0 %v1758_v57, %s2810_s15  ;;  %v2331_v62 = vpop.f32.mrb[37].mxu0  ;;  %s2689_s15 = scalar_lea.vmem %s2688_s3, 256 }
 0x521   : > { %v1761_v42 = vpop.f32.mrb[38].mxu0  ;;  %p2691_p13 = scmp.lt.s32.totalorder %s2689_s15, %s2683_s17 }
 0x522   : > { %2485 = vset.pattern.permute.xlu1 %v2800_v51  ;;  %v2332_v52 = vpop.f32.mrb[39].mxu0  ;;  %v2164_v42 = vld [vmem:[%s3525_s6] ss:$0 sm:$0xff] }
 0x523   : > { %1810 = vperm.xlu1 %2485, %v2538_v39   ;;  %p2692_p3 = por %p2691_p13, %p2690_p1 }
 0x524   : > { %1790 = vperm.xlu0 %2483, %v2538_v39  }
 0x525   : > { %p2693_p5 = pnand %p2692_p3, %p2686_p8 }
 0x527   : > { %2487 = vset.pattern.permute.xlu1 %v2798_v40 }
 0x528   : > { %1830 = vperm.xlu1 %2487, %v2538_v39   ;;  %2486 = vset.pattern.permute.xlu0 %v2801_v58 }
 0x529   : > { %1820 = vperm.xlu0 %2486, %v2538_v39  }
 0x52c   : > { %2488 = vset.pattern.permute.xlu1 %v2802_v2 }
 0x52d   : > { %1840 = vperm.xlu1 %2488, %v2538_v39   ;;  %2489 = vset.pattern.permute.xlu0 %v2803_v21 }
 0x52e   : > { %1850 = vperm.xlu0 %2489, %v2538_v39  }
 0x557   : > { %v914_v54 = vpop.permute.xlu0 %913 }
 0x558   : > { %v916_v51 = vadd.f32 %v914_v54, %v861_v45 }
 0x55a   : > { %918 = vst.msk [vmem:[#allocation5] sm:$0xff] %vm917_vm14, %v916_v51 }
 0x561   : > { %v998_v47 = vld [vmem:[#allocation5] sm:$0xff] }
 0x568   : > { %v1002_v55 = vpop.permute.xlu0 %1001 }
 0x569   : > { %v1004_v40 = vmul.f32 %v1002_v55, %v998_v47 }
 0x56c   : > { %v1056_v53 = vpop.permute.xlu0 %1055 }
 0x56d   : > { %v1058_v58 = vadd.f32 %v1056_v53, %v1004_v40 }
 0x56f   : > { %1060 = vst.msk [vmem:[#allocation5] sm:$0xff] %vm1059_vm15, %v1058_v58 }
 0x572   : > { %v1144_v2 = vpop.permute.xlu0 %1143 }
 0x574   : > { %v1340_v4 = vpop.permute.xlu1 %1339 }
 0x576   : > { %v1140_v30 = vld [vmem:[#allocation5] sm:$0xff]  ;;  %v1198_v21 = vpop.permute.xlu0 %1197 }
 0x577   : > { %v1146_v60 = vmul.f32 %v1144_v2, %v1140_v30 }
 0x579   : > { %v1200_v59 = vadd.f32 %v1198_v21, %v1146_v60 }
 0x57b   : > { %1202 = vst.msk [vmem:[#allocation5] sm:$0xff] %vm1201_vm1, %v1200_v59 }
 0x57c   : > { %v1286_v5 = vpop.permute.xlu0 %1285 }
 0x581   : > { %v1428_v3 = vpop.permute.xlu0 %1427 }
 0x582   : > { %v1282_v1 = vld [vmem:[#allocation5] sm:$0xff] }
 0x583   : > { %v1288_v7 = vmul.f32 %v1286_v5, %v1282_v1 }
 0x585   : > { %v1342_v12 = vadd.f32 %v1340_v4, %v1288_v7  ;;  %v1482_v50 = vpop.permute.xlu0 %1481  ;;  %v1570_v17 = vpop.permute.xlu1 %1569 }
 0x587   : > { %1344 = vst.msk [vmem:[#allocation5] sm:$0xff] %vm1343_vm3, %v1342_v12 }
 0x589   : > { %v1624_v14 = vpop.permute.xlu0 %1623 }
 0x58a   : > { %v1712_v20 = vpop.permute.xlu1 %1711 }
 0x58e   : > { %v1424_v6 = vld [vmem:[#allocation5] sm:$0xff] }
 0x58f   : > { %v1430_v8 = vmul.f32 %v1428_v3, %v1424_v6 }
 0x591   : > { %v1484_v35 = vadd.f32 %v1482_v50, %v1430_v8 }
 0x592   : > { %v1766_v27 = vpop.permute.xlu0 %1765 }
 0x593   : > { %1486 = vst.msk [vmem:[#allocation5] sm:$0xff] %vm1485_vm4, %v1484_v35 }
 0x598   : > { %v1781_v41 = vpop.permute.xlu1 %1780 }
 0x59a   : > { %v1566_v13 = vld [vmem:[#allocation5] sm:$0xff] }
 0x59b   : > { %v1572_v0 = vmul.f32 %v1570_v17, %v1566_v13 }
 0x59d   : > { %v1626_v15 = vadd.f32 %v1624_v14, %v1572_v0  ;;  %v1801_v18 = vpop.permute.xlu1 %1800 }
 0x59f   : > { %1628 = vst.msk [vmem:[#allocation5] sm:$0xff] %vm1627_vm5, %v1626_v15 }
 0x5a2   : > { %v1811_v24 = vpop.permute.xlu1 %1810 }
 0x5a3   : > { %v1791_v11 = vpop.permute.xlu0 %1790 }
 0x5a6   : > { %v1708_v23 = vld [vmem:[#allocation5] sm:$0xff] }
 0x5a7   : > { %v1714_v26 = vmul.f32 %v1712_v20, %v1708_v23  ;;  %v1831_v37 = vpop.permute.xlu1 %1830 }
 0x5a8   : > { %v1821_v34 = vpop.permute.xlu0 %1820 }
 0x5a9   : > { %v1768_v29 = vadd.f32 %v1766_v27, %v1714_v26 }
 0x5ab   : > { %1770 = vst.msk [vmem:[#allocation5] sm:$0xff] %vm1769_vm6, %v1768_v29 }
 0x5ac   : > { %v1841_v28 = vpop.permute.xlu1 %1840 }
 0x5ad   : > { %v1851_v39 = vpop.permute.xlu0 %1850 }
 0x5b2   : > { %v1777_v43 = vld [vmem:[#allocation5] sm:$0xff] }
 0x5b3   : > { %v1783_v44 = vmul.f32 %v1781_v41, %v1777_v43 }
 0x5b5   : > { %1784 = vst.msk [vmem:[#allocation5] sm:$0xff] %vm646_vm2, %v1783_v44 }
 0x5bc   : > { %v1787_v10 = vld [vmem:[#allocation5] sm:$0xff] }
 0x5bd   : > { %v1793_v16 = vmul.f32 %v1791_v11, %v1787_v10 }
 0x5bf   : > { %1794 = vst.msk [vmem:[#allocation5] sm:$0xff] %vm917_vm14, %v1793_v16 }
 0x5c6   : > { %v1797_v31 = vld [vmem:[#allocation5] sm:$0xff] }
 0x5c7   : > { %v1803_v22 = vmul.f32 %v1801_v18, %v1797_v31 }
 0x5c9   : > { %1804 = vst.msk [vmem:[#allocation5] sm:$0xff] %vm1059_vm15, %v1803_v22 }
 0x5d0   : > { %v1807_v25 = vld [vmem:[#allocation5] sm:$0xff] }
 0x5d1   : > { %v1813_v32 = vmul.f32 %v1811_v24, %v1807_v25 }
 0x5d3   : > { %1814 = vst.msk [vmem:[#allocation5] sm:$0xff] %vm1201_vm1, %v1813_v32 }
 0x5da   : > { %v1817_v33 = vld [vmem:[#allocation5] sm:$0xff] }
 0x5db   : > { %v1823_v36 = vmul.f32 %v1821_v34, %v1817_v33 }
 0x5dd   : > { %1824 = vst.msk [vmem:[#allocation5] sm:$0xff] %vm1343_vm3, %v1823_v36 }
 0x5e4   : > { %v1827_v38 = vld [vmem:[#allocation5] sm:$0xff] }
 0x5e5   : > { %v1833_v19 = vmul.f32 %v1831_v37, %v1827_v38 }
 0x5e7   : > { %1834 = vst.msk [vmem:[#allocation5] sm:$0xff] %vm1485_vm4, %v1833_v19 }
 0x5ee   : > { %v1837_v46 = vld [vmem:[#allocation5] sm:$0xff] }
 0x5ef   : > { %v1843_v48 = vmul.f32 %v1841_v28, %v1837_v46 }
 0x5f1   : > { %1844 = vst.msk [vmem:[#allocation5] sm:$0xff] %vm1627_vm5, %v1843_v48 }
 0x5f8   : > { %v1847_v49 = vld [vmem:[#allocation5] sm:$0xff] }
 0x5f9   : > { %v1853_v9 = vmul.f32 %v1851_v39, %v1847_v49 }
 0x5fb   : > { %1854 = vst.msk [vmem:[#allocation5] sm:$0xff] %vm1769_vm6, %v1853_v9 }
 0x602   : > { %v1855_v57 = vld [vmem:[#allocation5] sm:$0xff] }
 0x603   : > { %v1856_v62 = vpack.c.bf16 %v1855_v57, %v1855_v57 }
 0x605   : > { %2338 = vmatmul.mubr.msk.bf16.vlgmr.msra.gmra.mrb[36].mxu1 %vm474_vm0, %v1856_v62 }
 0x6d8   : > { %v1910_v52 = vpop.f32.mrb[36].mxu1 }
 0x6d9   : > { %v1927_v56 = vadd.f32 %v2164_v42, %v1910_v52  ;;  %v2339_v45 = vpop.f32.mrb[37].mxu1 }
 0x6da   : > { %v1913_v54 = vpop.f32.mrb[38].mxu1 }
 0x6db   : > { %v2340_v51 = vpop.f32.mrb[39].mxu1  ;;  %1928 = vst.msk [vmem:[%s446_s10] sm:$0xff] %vm474_vm0, %v1927_v56 }
 0x6dc   : > { %2696 = shalt.err (!%p2693_p5)
}
 0x6dd   : > { %s2697_s22 = scalar_lea.hbm %s3469_s12, 128  ;;  %s2701_s8 = scalar_lea.hbm %s3557_s18, 256 }
 0x6de   : > { %p2698_p6 = scmp.ne.s32.totalorder %s3469_s12, %s2697_s22  ;;  %p2702_p7 = scmp.lt.u32.totalorder %s3469_s12, %s3557_s18 }
 0x6df   : > { %p2703_p11 = scmp.lt.u32.totalorder %s2701_s8, %s2697_s22  ;;  %p2705_p0 = scmp.lt.u32.totalorder %s2697_s22, %s3469_s12 }
 0x6e0   : > { %p2699_p12 = pnand %p2698_p6, %p3558_p2 }
 0x6e1   : > { %p2704_p9 = por %p2703_p11, %p2702_p7 }
 0x6e2   : > { %p2700_p10 = pneg %p2699_p12 }
 0x6e3   : > { %p2706_p4 = por %p2705_p0, %p2704_p9 }
 0x6e5   : > { %p2707_p8 = pnand %p2706_p4, %p2700_p10 }
 0x6e7   : > { %2710 = shalt.err (!%p2707_p8)
}
 0x6e8   : > { %2357 = dma.vmem_to_hbm [thread:$0]  (%p3558_p2), %s3471_s2, 128, %s3469_s12, %s1937_s27  }
 0x6e9 PF: > { %s3559_s9 = sld [smem:[#allocation21_spill]]  ;;  %s3560_s7 = sld [smem:[#allocation22_spill]] }
 0x6ea   : > { %p3562_p13 = scmp.ge.s32.totalorder %s2777_s29, 2 }
 0x6ef   : > { %s1963_s23 = sand.u32 1, %s3559_s9   ;;  %p3561_p1 = scmp.ne.s32.totalorder %s3560_s7, 0 }
 0x6f0   : > { %s1964_s10 = scalar_lea.sflag [#allocation8], %s1963_s23 }
 0x6f1   : > { %p2377_p3 = pnand %p3562_p13, %p3561_p1 }
 0x6f3   : > { %2752 = dma.done.wait (!%p2377_p3), %s1964_s10, 128  }
 0x6f4   : > { %2754 = vsyncadd (!%p2377_p3), %s1964_s10, 4294967168  ;;  %s27_s29 = sadd.s32 1, %s2777_s29   ;;  %s3563_s24 = smov %s2761_s25 }
 0x6f5   : > { %p24_p5 = scmp.ge.s32.totalorder %s27_s29, 4   ;;  %s3564_s25 = smov %s2765_s26 }
 0x6f6   : > { %s3565_s26 = smov %s3022_s20  ;;  %s3566_s27 = smov %s2773_s28 }
 0x6f7   : > { %s3567_s28 = smov %s3569_s14  ;;  %26 = sbr.rel (!%p24_p5) target bundleno = 14 (0xe), region = 140 }
 0x6fe   :  { %1969 = vsyncpa [#allocation7], 1 }
 0x6ff   :  { %1971 = vsyncpa [#allocation7 + $0x1], 1 }
 0x700   :  { %1972 = vsyncpa [#allocation10], 1 }
 0x701   :  { %1974 = vsyncpa [#allocation10 + $0x1], 1 }
 0x702   :  { %1975 = vsyncpa [#allocation13], 1 }
 0x703   :  { %1976 = vsyncpa [#allocation8], 1 }
 0x704   :  { %1978 = vsyncpa [#allocation8 + $0x1], 1 }

</bundles_post_ra>
